<compile_context>
chip_gen: v7x
topology: tpu7x:2x2x1
jax: 0.10.0
libtpu: 0.0.40
codegen_flags: <defaults>
</compile_context>

<pallas_src>
import jax
import jax.numpy as jnp
from jax.experimental import pallas as pl
from jax.experimental.pallas import tpu as pltpu

D_IN, D_HID, D_OUT = 1536, 512, 128
EPS = 1e-12  # F.normalize default eps


def query_net_kernel(x_ref, w1_ref, b1_ref, w2_ref, b2_ref, o_ref):
    # First linear + ReLU (MXU matmul, f32 accumulation).
    h = jnp.dot(x_ref[...], w1_ref[...], preferred_element_type=jnp.float32)
    h = jnp.maximum(h + b1_ref[...], 0.0)   # b1_ref is (1, D_HID) -> row broadcast

    # Dropout(p=0.7): identity in eval mode.

    # Second linear + ReLU. Cast h to the weight dtype (no-op for f32 weights)
    # so the second dot also runs at the MXU-native input precision.
    y = jnp.dot(h.astype(w2_ref.dtype), w2_ref[...],
                preferred_element_type=jnp.float32)
    y = jnp.maximum(y + b2_ref[...], 0.0)

    # L2 normalize along the feature (last) axis: y / max(||y||_2, eps).
    # rsqrt(max(sumsq, eps^2)) == 1 / max(||y||, eps)  (sqrt is monotone),
    # and it is a single EUP op instead of sqrt + reciprocal.
    sumsq = jnp.sum(y * y, axis=-1, keepdims=True)
    inv = jax.lax.rsqrt(jnp.maximum(sumsq, EPS * EPS))
    o_ref[...] = (y * inv).astype(o_ref.dtype)


def _round_up(n, m):
    return -(-n // m) * m


def query_net_forward(x, w1t, b1, w2t, b2, *, block_b=256, matmul_dtype=None):
    """x: [B, 1536] float32. Returns [B, 128] float32 (L2-normalized rows).

    block_b: batch tile size (rows per grid step). 256 fills the MXU on
             v6e/v7x; 128 is already full-width on v5e.
    matmul_dtype: optional dtype (e.g. jnp.bfloat16) for the MXU inputs.
    """
    B = x.shape[0]
    assert x.shape[1] == D_IN

    # Pick the batch tile: cap at the (8-aligned) batch, and keep at least two
    # grid steps when the batch allows it so v7x can use both TensorCores.
    bb = max(8, min(block_b, _round_up(B, 8)))
    if B >= 16 and pl.cdiv(_round_up(B, 8), bb) < 2:
        bb = _round_up(pl.cdiv(B, 2), 8)
    B_pad = pl.cdiv(B, bb) * bb

    x_in = x
    if B_pad != B:
        x_in = jnp.pad(x, ((0, B_pad - B), (0, 0)))

    w1_in, w2_in = w1t, w2t
    if matmul_dtype is not None:
        x_in = x_in.astype(matmul_dtype)
        w1_in = w1t.astype(matmul_dtype)
        w2_in = w2t.astype(matmul_dtype)

    b1_2d = b1.reshape(1, D_HID).astype(jnp.float32)
    b2_2d = b2.reshape(1, D_OUT).astype(jnp.float32)

    grid = (B_pad // bb,)
    out = pl.pallas_call(
        query_net_kernel,
        out_shape=jax.ShapeDtypeStruct((B_pad, D_OUT), jnp.float32),
        grid_spec=pltpu.PrefetchScalarGridSpec(
            num_scalar_prefetch=0,
            grid=grid,
            in_specs=[
                pl.BlockSpec((bb, D_IN), lambda i: (i, 0)),      # x tile
                pl.BlockSpec((D_IN, D_HID), lambda i: (0, 0)),   # W1^T (resident)
                pl.BlockSpec((1, D_HID), lambda i: (0, 0)),      # b1
                pl.BlockSpec((D_HID, D_OUT), lambda i: (0, 0)),  # W2^T (resident)
                pl.BlockSpec((1, D_OUT), lambda i: (0, 0)),      # b2
            ],
            out_specs=pl.BlockSpec((bb, D_OUT), lambda i: (i, 0)),
        ),
        compiler_params=pltpu.CompilerParams(
            dimension_semantics=("parallel",),
        ),
    )(x_in, w1_in, b1_2d, w2_in, b2_2d)

    return out[:B]


def reference_forward(x, w1t, b1, w2t, b2):
    h = jnp.maximum(x @ w1t + b1, 0.0)
    y = jnp.maximum(h @ w2t + b2, 0.0)
    norm = jnp.sqrt(jnp.sum(y * y, axis=1, keepdims=True))
    return y / jnp.maximum(norm, EPS)


if __name__ == "__main__":
    key = jax.random.PRNGKey(0)
    k_x, k_w1, k_b1, k_w2, k_b2 = jax.random.split(key, 5)

    B = 8  # small batch for the smoke test
    x = jax.random.normal(k_x, (B, D_IN), dtype=jnp.float32)

    # Deterministic parameter init (PyTorch Linear-style uniform bounds).
    lim1 = 1.0 / (D_IN ** 0.5)
    lim2 = 1.0 / (D_HID ** 0.5)
    w1t = jax.random.uniform(k_w1, (D_IN, D_HID), jnp.float32, -lim1, lim1)
    b1 = jax.random.uniform(k_b1, (D_HID,), jnp.float32, -lim1, lim1)
    w2t = jax.random.uniform(k_w2, (D_HID, D_OUT), jnp.float32, -lim2, lim2)
    b2 = jax.random.uniform(k_b2, (D_OUT,), jnp.float32, -lim2, lim2)

    out = query_net_forward(x, w1t, b1, w2t, b2)
    out = jax.block_until_ready(out)

    ref = reference_forward(x, w1t, b1, w2t, b2)
    assert out.shape == (B, D_OUT)
    assert jnp.allclose(out, ref, atol=1e-5, rtol=1e-5), "mismatch vs reference"

    # Also exercise a non-divisible, larger batch to cover padding + multi-step grid.
    B2 = 300
    x2 = jax.random.normal(k_x, (B2, D_IN), dtype=jnp.float32)
    out2 = jax.block_until_ready(query_net_forward(x2, w1t, b1, w2t, b2))
    ref2 = reference_forward(x2, w1t, b1, w2t, b2)
    assert out2.shape == (B2, D_OUT)
    assert jnp.allclose(out2, ref2, atol=1e-5, rtol=1e-5), "mismatch (padded batch)"

    print("KERNEL_OK")
</pallas_src>

<mosaic_0001>
module attributes {stable_mosaic.version = 11 : i64} {
  func.func @query_net_kernel(%arg0: i32, %arg1: memref<8x1536xf32, #tpu.memory_space<vmem>>, %arg2: memref<1536x512xf32, #tpu.memory_space<vmem>>, %arg3: memref<1x512xf32, #tpu.memory_space<vmem>>, %arg4: memref<512x128xf32, #tpu.memory_space<vmem>>, %arg5: memref<1x128xf32, #tpu.memory_space<vmem>>, %arg6: memref<8x128xf32, #tpu.memory_space<vmem>>) attributes {dimension_semantics = [#tpu.dimension_semantics<parallel>], iteration_bounds = array<i64: 1>, scalar_prefetch = 0 : i64, scratch_operands = 0 : i64, tpu.core_type = #tpu.core_type<tc>, window_params = [{transform_indices = @transform_0, window_bounds = array<i64: 8, 1536>}, {pipeline_mode = #tpu.pipeline_mode<synchronous>, transform_indices = @transform_1, window_bounds = array<i64: 1536, 512>}, {pipeline_mode = #tpu.pipeline_mode<synchronous>, transform_indices = @transform_2, window_bounds = array<i64: 1, 512>}, {pipeline_mode = #tpu.pipeline_mode<synchronous>, transform_indices = @transform_3, window_bounds = array<i64: 512, 128>}, {pipeline_mode = #tpu.pipeline_mode<synchronous>, transform_indices = @transform_4, window_bounds = array<i64: 1, 128>}, {transform_indices = @transform_5, window_bounds = array<i64: 8, 128>}]} {
    %c0 = arith.constant 0 : index
    %c0_0 = arith.constant 0 : index
    %0 = vector.load %arg1[%c0, %c0_0] : memref<8x1536xf32, #tpu.memory_space<vmem>>, vector<8x1536xf32>
    %c0_1 = arith.constant 0 : index
    %c0_2 = arith.constant 0 : index
    %1 = vector.load %arg2[%c0_1, %c0_2] : memref<1536x512xf32, #tpu.memory_space<vmem>>, vector<1536x512xf32>
    %cst = arith.constant dense<0.000000e+00> : vector<8x512xf32>
    %2 = tpu.matmul %0, %1, %cst {dimension_numbers = #tpu.dot_dimension_numbers<[1], [0], [0], [1], [0, 0, 1, 1], [], []>} : vector<8x1536xf32>, vector<1536x512xf32>, vector<8x512xf32> -> vector<8x512xf32>
    %c0_3 = arith.constant 0 : index
    %c0_4 = arith.constant 0 : index
    %3 = vector.load %arg3[%c0_3, %c0_4] : memref<1x512xf32, #tpu.memory_space<vmem>>, vector<1x512xf32>
    %4 = vector.broadcast %3 : vector<1x512xf32> to vector<8x512xf32>
    %5 = arith.addf %2, %4 : vector<8x512xf32>
    %cst_5 = arith.constant 0.000000e+00 : f32
    %6 = vector.broadcast %cst_5 : f32 to vector<8x512xf32>
    %7 = arith.maximumf %5, %6 : vector<8x512xf32>
    %c0_6 = arith.constant 0 : index
    %c0_7 = arith.constant 0 : index
    %8 = vector.load %arg4[%c0_6, %c0_7] : memref<512x128xf32, #tpu.memory_space<vmem>>, vector<512x128xf32>
    %cst_8 = arith.constant dense<0.000000e+00> : vector<8x128xf32>
    %9 = tpu.matmul %7, %8, %cst_8 {dimension_numbers = #tpu.dot_dimension_numbers<[1], [0], [0], [1], [0, 0, 1, 1], [], []>} : vector<8x512xf32>, vector<512x128xf32>, vector<8x128xf32> -> vector<8x128xf32>
    %c0_9 = arith.constant 0 : index
    %c0_10 = arith.constant 0 : index
    %10 = vector.load %arg5[%c0_9, %c0_10] : memref<1x128xf32, #tpu.memory_space<vmem>>, vector<1x128xf32>
    %11 = vector.broadcast %10 : vector<1x128xf32> to vector<8x128xf32>
    %12 = arith.addf %9, %11 : vector<8x128xf32>
    %cst_11 = arith.constant 0.000000e+00 : f32
    %13 = vector.broadcast %cst_11 : f32 to vector<8x128xf32>
    %14 = arith.maximumf %12, %13 : vector<8x128xf32>
    %15 = arith.mulf %14, %14 : vector<8x128xf32>
    %cst_12 = arith.constant dense<0.000000e+00> : vector<8xf32>
    %16 = vector.multi_reduction <add>, %15, %cst_12 [1] : vector<8x128xf32> to vector<8xf32>
    %17 = vector.shape_cast %16 : vector<8xf32> to vector<8x1xf32>
    %cst_13 = arith.constant 1.000000e-24 : f32
    %18 = vector.broadcast %cst_13 : f32 to vector<8x1xf32>
    %19 = arith.maximumf %17, %18 : vector<8x1xf32>
    %20 = math.rsqrt %19 : vector<8x1xf32>
    %21 = vector.broadcast %20 : vector<8x1xf32> to vector<8x128xf32>
    %22 = arith.mulf %14, %21 : vector<8x128xf32>
    %c0_14 = arith.constant 0 : index
    %c0_15 = arith.constant 0 : index
    %23 = vector.load %arg6[%c0_14, %c0_15] : memref<8x128xf32, #tpu.memory_space<vmem>>, vector<8x128xf32>
    tpu.vector_store %arg6[%c0_14, %c0_15], %22 {strides = array<i32>} : memref<8x128xf32, #tpu.memory_space<vmem>>, vector<8x128xf32>,
    return
  }
  func.func @transform_0(%arg0: i32) -> (i32, i32) {
    %c0_i32 = arith.constant 0 : i32
    %c0_i32_0 = arith.constant 0 : i32
    return %arg0, %c0_i32 : i32, i32
  }
  func.func @transform_1(%arg0: i32) -> (i32, i32) {
    %c0_i32 = arith.constant 0 : i32
    %c0_i32_0 = arith.constant 0 : i32
    %c0_i32_1 = arith.constant 0 : i32
    return %c0_i32, %c0_i32_0 : i32, i32
  }
  func.func @transform_2(%arg0: i32) -> (i32, i32) {
    %c0_i32 = arith.constant 0 : i32
    %c0_i32_0 = arith.constant 0 : i32
    %c0_i32_1 = arith.constant 0 : i32
    return %c0_i32, %c0_i32_0 : i32, i32
  }
  func.func @transform_3(%arg0: i32) -> (i32, i32) {
    %c0_i32 = arith.constant 0 : i32
    %c0_i32_0 = arith.constant 0 : i32
    %c0_i32_1 = arith.constant 0 : i32
    return %c0_i32, %c0_i32_0 : i32, i32
  }
  func.func @transform_4(%arg0: i32) -> (i32, i32) {
    %c0_i32 = arith.constant 0 : i32
    %c0_i32_0 = arith.constant 0 : i32
    %c0_i32_1 = arith.constant 0 : i32
    return %c0_i32, %c0_i32_0 : i32, i32
  }
  func.func @transform_5(%arg0: i32) -> (i32, i32) {
    %c0_i32 = arith.constant 0 : i32
    %c0_i32_0 = arith.constant 0 : i32
    return %arg0, %c0_i32 : i32, i32
  }
}

</mosaic_0001>

<bundles_post_ra>
// kernel: tpu_custom_call.1
= control target key start
LH: loop header
LB: loop body
LE: loop exit
PB: predicated region body
PF: predicated region fallthrough
CT: control target
= control target key end

     0   :  { %10 = vsyncpa [#allocation3], 0  ;;  %s3168_s0 = inlined_call_operand.hbm [shape: f32[8,1536], index: 0, kind: input, shape index: {}]   ;;  %s3169_s1 = inlined_call_operand.hbm [shape: f32[1536,512], index: 1, kind: input, shape index: {}]   ;;  %s3170_s2 = inlined_call_operand.hbm [shape: f32[1,512], index: 2, kind: input, shape index: {}]   ;;  %s3171_s3 = inlined_call_operand.hbm [shape: f32[512,128], index: 3, kind: input, shape index: {}]   ;;  %s3172_s4 = inlined_call_operand.hbm [shape: f32[1,128], index: 4, kind: input, shape index: {}]   ;;  %s3173_s5 = inlined_call_operand.hbm [shape: f32[8,128], index: 5, kind: output, shape index: {}]  }
   0x1   :  { %11 = vsyncpa [#allocation6], 0 }
   0x2   :  { %12 = vsyncpa [#allocation9], 0 }
   0x3   :  { %13 = vsyncpa [#allocation4], 0  ;;  %s3056_s18 = smov [#allocation5]   ;;  %s2916_s22 = scalar_lea.hbm %s3169_s1, 98304 }
   0x4   :  { %s29_s19 = sshll.u32 %s3056_s18, 4  ;;  %p2917_p0 = scmp.ne.s32.totalorder %s3169_s1, %s2916_s22  ;;  %s30_s19 = int_to_ptr.vmem [resolvable:$true] %s29_s19 }
   0x5   :  { %p2920_p1 = scmp.lt.u32.totalorder %s2916_s22, %s3169_s1 }
   0x7   :  { %p2922_p2 = pnand %p2920_p1, %p2917_p0 }
   0x9   :  { %2925 = shalt.err (!%p2922_p2)
}
   0xa   :  { %s2926_s27 = scalar_lea.vmem %s30_s19, 98304  ;;  %p2931_p4 = scmp.lt.s32.totalorder %s30_s19, %s30_s19 }
   0xb   :  { %p2927_p3 = scmp.ne.s32.totalorder %s30_s19, %s2926_s27  ;;  %p2932_p5 = scmp.lt.s32.totalorder %s2926_s27, %s2926_s27 }
   0xd   :  { %p2933_p6 = por %p2932_p5, %p2931_p4 }
   0xf   :  { %p2934_p7 = pnand %p2933_p6, %p2927_p3 }
  0x11   :  { %2937 = shalt.err (!%p2934_p7)
}
  0x12   :  { %s3057_s28 = smov 512   ;;  %s3058_s29 = smov 32  }
  0x13   :  { %35 = dma.hbm_to_vmem [thread:$0]  %s3169_s1, 98304, %s30_s19, [#allocation6], %s3057_s28, %s3057_s28, %s3058_s29  }
  0x14   :  { %s3059_s7 = smov [#allocation8]   ;;  %s2938_s11 = scalar_lea.hbm %s3171_s3, 8192 }
  0x15   :  { %s51_s8 = sshll.u32 %s3059_s7, 4  ;;  %p2939_p8 = scmp.ne.s32.totalorder %s3171_s3, %s2938_s11  ;;  %s52_s8 = int_to_ptr.vmem [resolvable:$true] %s51_s8 }
  0x16   :  { %p2942_p9 = scmp.lt.u32.totalorder %s2938_s11, %s3171_s3 }
  0x18   :  { %p2944_p10 = pnand %p2942_p9, %p2939_p8 }
  0x1a   :  { %2947 = shalt.err (!%p2944_p10)
}
  0x1b   :  { %s2948_s16 = scalar_lea.vmem %s52_s8, 8192  ;;  %p2953_p12 = scmp.lt.s32.totalorder %s52_s8, %s52_s8 }
  0x1c   :  { %p2949_p11 = scmp.ne.s32.totalorder %s52_s8, %s2948_s16  ;;  %p2954_p13 = scmp.lt.s32.totalorder %s2948_s16, %s2948_s16 }
  0x1e   :  { %p2955_p0 = por %p2954_p13, %p2953_p12 }
  0x20   :  { %p2956_p1 = pnand %p2955_p0, %p2949_p11 }
  0x22   :  { %2959 = shalt.err (!%p2956_p1)
}
  0x23   :  { %s3060_s1 = smov 128   ;;  %s3061_s17 = smov 8  }
  0x24   :  { %57 = dma.hbm_to_vmem [thread:$0]  %s3171_s3, 8192, %s52_s8, [#allocation9], %s3060_s1, %s3060_s1, %s3061_s17  }
  0x25   :  { %s3062_s20 = smov [#allocation2]   ;;  %s3063_s22 = smov [#allocation7]  }
  0x26   :  { %s20_s21 = sshll.u32 %s3062_s20, 4  ;;  %s42_s23 = sshll.u32 %s3063_s22, 4  ;;  %s21_s21 = int_to_ptr.vmem [resolvable:$true] %s20_s21  ;;  %s43_s23 = int_to_ptr.vmem [resolvable:$true] %s42_s23 }
  0x27   :  { %s2960_s26 = scalar_lea.hbm %s3168_s0, 1536 }
  0x28   :  { %p2961_p2 = scmp.ne.s32.totalorder %s3168_s0, %s2960_s26  ;;  %p2964_p3 = scmp.lt.u32.totalorder %s2960_s26, %s3168_s0 }
  0x2a   :  { %p2966_p4 = pnand %p2964_p3, %p2961_p2 }
  0x2c   :  { %2969 = shalt.err (!%p2966_p4)
}
  0x2d   :  { %s2970_s3 = scalar_lea.vmem %s21_s21, 1536  ;;  %p2975_p6 = scmp.lt.s32.totalorder %s21_s21, %s21_s21 }
  0x2e   :  { %p2971_p5 = scmp.ne.s32.totalorder %s21_s21, %s2970_s3  ;;  %p2976_p7 = scmp.lt.s32.totalorder %s2970_s3, %s2970_s3 }
  0x30   :  { %p2977_p8 = por %p2976_p7, %p2975_p6 }
  0x32   :  { %p2978_p9 = pnand %p2977_p8, %p2971_p5 }
  0x34   :  { %2981 = shalt.err (!%p2978_p9)
}
  0x35   :  { %23 = dma.hbm_to_vmem [thread:$0]  %s3168_s0, 1536, %s21_s21, [#allocation3]  }
  0x36   :  { %s2982_s10 = scalar_lea.hbm %s3170_s2, 64 }
  0x37   :  { %p2983_p10 = scmp.ne.s32.totalorder %s3170_s2, %s2982_s10  ;;  %p2986_p11 = scmp.lt.u32.totalorder %s2982_s10, %s3170_s2 }
  0x39   :  { %p2988_p12 = pnand %p2986_p11, %p2983_p10 }
  0x3b   :  { %2991 = shalt.err (!%p2988_p12)
}
  0x3c   :  { %s2992_s15 = scalar_lea.vmem %s43_s23, 64  ;;  %p2997_p0 = scmp.lt.s32.totalorder %s43_s23, %s43_s23 }
  0x3d   :  { %p2993_p13 = scmp.ne.s32.totalorder %s43_s23, %s2992_s15  ;;  %p2998_p1 = scmp.lt.s32.totalorder %s2992_s15, %s2992_s15 }
  0x3f   :  { %p2999_p2 = por %p2998_p1, %p2997_p0 }
  0x41   :  { %p3000_p3 = pnand %p2999_p2, %p2993_p13 }
  0x43   :  { %3003 = shalt.err (!%p3000_p3)
}
  0x44   :  { %45 = dma.hbm_to_vmem [thread:$0]  %s3170_s2, 64, %s43_s23, [#allocation6]  }
  0x45   :  { %s3064_s1 = smov [#allocation10]   ;;  %s3004_s20 = scalar_lea.hbm %s3172_s4, 16 }
  0x46   :  { %s64_s17 = sshll.u32 %s3064_s1, 4  ;;  %p3005_p4 = scmp.ne.s32.totalorder %s3172_s4, %s3004_s20  ;;  %s65_s17 = int_to_ptr.vmem [resolvable:$true] %s64_s17 }
  0x47   :  { %p3008_p5 = scmp.lt.u32.totalorder %s3004_s20, %s3172_s4 }
  0x49   :  { %p3010_p6 = pnand %p3008_p5, %p3005_p4 }
  0x4b   :  { %3013 = shalt.err (!%p3010_p6)
}
  0x4c   :  { %s3014_s26 = scalar_lea.vmem %s65_s17, 16  ;;  %s3018_s2 = scalar_lea.vmem %s65_s17, 32 }
  0x4d   :  { %p3015_p7 = scmp.ne.s32.totalorder %s65_s17, %s3014_s26  ;;  %p3019_p8 = scmp.lt.s32.totalorder %s65_s17, %s65_s17 }
  0x4e   :  { %p3020_p9 = scmp.lt.s32.totalorder %s3018_s2, %s3014_s26 }
  0x50   :  { %p3021_p10 = por %p3020_p9, %p3019_p8 }
  0x52   :  { %p3022_p11 = pnand %p3021_p10, %p3015_p7 }
  0x54   :  { %3025 = shalt.err (!%p3022_p11)
}
  0x55   :  { %67 = dma.hbm_to_vmem [thread:$0]  %s3172_s4, 16, %s65_s17, [#allocation9]  }
  0x56   :  { %3048 = dma.done.wait [#allocation3], 1536  }
  0x57   :  { %3049 = vsyncadd [#allocation3], 4294965760 }
  0x58   :  { %3050 = dma.done.wait [#allocation6], 98368  }
  0x59   :  { %3051 = vsyncadd [#allocation6], 4294868928 }
  0x5a   :  { %3052 = dma.done.wait [#allocation9], 8208  }
  0x5b   :  { %3053 = vsyncadd [#allocation9], 4294959088  ;;  %v96_v0 = vld [vmem:[#allocation5 + $0x8] sm:$0xff]  ;;  %v98_v2 = vld [vmem:[#allocation5 + $0x18] sm:$0xff]  ;;  %s3065_s4 = smov [#allocation11]  }
  0x5c   :  { %v100_v1 = vld [vmem:[#allocation5 + $0x28] sm:$0xff]  ;;  %v102_v4 = vld [vmem:[#allocation5 + $0x38] sm:$0xff]  ;;  %v95_v5 = vld [vmem:[#allocation5] sm:$0xff]  ;;  %s1966_s28 = sshll.u32 %s3065_s4, 4  ;;  %s1967_s28 = int_to_ptr.vmem [resolvable:$true] %s1966_s28 }
  0x5d   :  { %v2048_v3 = vpack.c.bf16 %v100_v1, %v96_v0  ;;  %v99_v6 = vld [vmem:[#allocation5 + $0x20] sm:$0xff]  ;;  %v2432_v7 = vpack.c.bf16 %v102_v4, %v98_v2  ;;  %v97_v9 = vld [vmem:[#allocation5 + $0x10] sm:$0xff]  ;;  %v104_v11 = vld [vmem:[#allocation5 + $0x48] sm:$0xff]  ;;  %s3026_s29 = scalar_lea.vmem %s1967_s28, 128  ;;  %p3031_p13 = scmp.lt.s32.totalorder %s1967_s28, %s1967_s28 }
  0x5e   :  { %v2050_v8 = vpack.c.bf16 %v99_v6, %v95_v5  ;;  %v101_v10 = vld [vmem:[#allocation5 + $0x30] sm:$0xff]  ;;  %v108_v13 = vld [vmem:[#allocation5 + $0x68] sm:$0xff]  ;;  %v106_v14 = vld [vmem:[#allocation5 + $0x58] sm:$0xff]  ;;  %p3027_p12 = scmp.ne.s32.totalorder %s1967_s28, %s3026_s29  ;;  %p3032_p0 = scmp.lt.s32.totalorder %s3026_s29, %s3026_s29 }
  0x5f   :  { %2049 = vmatprep.subr.bf16.mxu0 %v2048_v3  ;;  %v2434_v12 = vpack.c.bf16 %v101_v10, %v97_v9  ;;  %v110_v15 = vld [vmem:[#allocation5 + $0x78] sm:$0xff]  ;;  %2433 = vmatprep.subr.bf16.mxu1 %v2432_v7  ;;  %v2052_v16 = vpack.c.bf16 %v108_v13, %v104_v11  ;;  %v103_v18 = vld [vmem:[#allocation5 + $0x40] sm:$0xff]  ;;  %v105_v20 = vld [vmem:[#allocation5 + $0x50] sm:$0xff] }
  0x60   :  { %2051 = vmatpush1.bf16.msra.mxu0 %v2050_v8  ;;  %v2436_v17 = vpack.c.bf16 %v110_v15, %v106_v14  ;;  %v107_v19 = vld [vmem:[#allocation5 + $0x60] sm:$0xff]  ;;  %v109_v22 = vld [vmem:[#allocation5 + $0x70] sm:$0xff]  ;;  %v112_v23 = vld [vmem:[#allocation5 + $0x88] sm:$0xff]  ;;  %p3033_p1 = por %p3032_p0, %p3031_p13 }
  0x61   :  { %2435 = vmatpush1.bf16.msra.mxu1 %v2434_v12  ;;  %v2054_v21 = vpack.c.bf16 %v107_v19, %v103_v18  ;;  %v116_v24 = vld [vmem:[#allocation5 + $0xa8] sm:$0xff]  ;;  %2053 = vmatprep.subr.bf16.mxu0 %v2052_v16  ;;  %v2438_v25 = vpack.c.bf16 %v109_v22, %v105_v20  ;;  %v114_v27 = vld [vmem:[#allocation5 + $0x98] sm:$0xff]  ;;  %v111_v29 = vld [vmem:[#allocation5 + $0x80] sm:$0xff] }
  0x62   :  { %2437 = vmatprep.subr.bf16.mxu1 %v2436_v17  ;;  %v2056_v26 = vpack.c.bf16 %v116_v24, %v112_v23  ;;  %v118_v28 = vld [vmem:[#allocation5 + $0xb8] sm:$0xff]  ;;  %v115_v31 = vld [vmem:[#allocation5 + $0xa0] sm:$0xff]  ;;  %v113_v32 = vld [vmem:[#allocation5 + $0x90] sm:$0xff]  ;;  %p3034_p2 = pnand %p3033_p1, %p3027_p12 }
  0x63   :  { %v2440_v30 = vpack.c.bf16 %v118_v28, %v114_v27  ;;  %v117_v33 = vld [vmem:[#allocation5 + $0xb0] sm:$0xff]  ;;  %v2058_v34 = vpack.c.bf16 %v115_v31, %v111_v29  ;;  %v120_v35 = vld [vmem:[#allocation5 + $0xc8] sm:$0xff]  ;;  %v122_v37 = vld [vmem:[#allocation5 + $0xd8] sm:$0xff] }
  0x64   :  { %2055 = vmatpush1.bf16.msra.mxu0 %v2054_v21  ;;  %v124_v36 = vld [vmem:[#allocation5 + $0xe8] sm:$0xff]  ;;  %v2442_v38 = vpack.c.bf16 %v117_v33, %v113_v32  ;;  %v126_v40 = vld [vmem:[#allocation5 + $0xf8] sm:$0xff]  ;;  %v119_v41 = vld [vmem:[#allocation5 + $0xc0] sm:$0xff] }
  0x65   :  { %2439 = vmatpush1.bf16.msra.mxu1 %v2438_v25  ;;  %2057 = vmatprep.subr.bf16.mxu0 %v2056_v26  ;;  %v2060_v39 = vpack.c.bf16 %v124_v36, %v120_v35  ;;  %v123_v42 = vld [vmem:[#allocation5 + $0xe0] sm:$0xff]  ;;  %v2444_v43 = vpack.c.bf16 %v126_v40, %v122_v37  ;;  %v121_v44 = vld [vmem:[#allocation5 + $0xd0] sm:$0xff]  ;;  %v128_v46 = vld [vmem:[#allocation5 + $0x108] sm:$0xff] }
  0x66   :  { %2441 = vmatprep.subr.bf16.mxu1 %v2440_v30  ;;  %v125_v45 = vld [vmem:[#allocation5 + $0xf0] sm:$0xff]  ;;  %v132_v47 = vld [vmem:[#allocation5 + $0x128] sm:$0xff]  ;;  %v130_v48 = vld [vmem:[#allocation5 + $0x118] sm:$0xff]  ;;  %v2062_v50 = vpack.c.bf16 %v123_v42, %v119_v41 }
  0x67   :  { %v134_v49 = vld [vmem:[#allocation5 + $0x138] sm:$0xff]  ;;  %v2446_v51 = vpack.c.bf16 %v125_v45, %v121_v44  ;;  %v2064_v52 = vpack.c.bf16 %v132_v47, %v128_v46  ;;  %v127_v53 = vld [vmem:[#allocation5 + $0x100] sm:$0xff]  ;;  %v129_v55 = vld [vmem:[#allocation5 + $0x110] sm:$0xff] }
  0x68   :  { %2059 = vmatpush1.bf16.msra.mxu0 %v2058_v34  ;;  %v131_v54 = vld [vmem:[#allocation5 + $0x120] sm:$0xff]  ;;  %v2448_v56 = vpack.c.bf16 %v134_v49, %v130_v48  ;;  %v133_v57 = vld [vmem:[#allocation5 + $0x130] sm:$0xff]  ;;  %v136_v58 = vld [vmem:[#allocation5 + $0x148] sm:$0xff] }
  0x69   :  { %2443 = vmatpush1.bf16.msra.mxu1 %v2442_v38  ;;  %2061 = vmatprep.subr.bf16.mxu0 %v2060_v39  ;;  %v140_v59 = vld [vmem:[#allocation5 + $0x168] sm:$0xff]  ;;  %v138_v60 = vld [vmem:[#allocation5 + $0x158] sm:$0xff]  ;;  %v2066_v62 = vpack.c.bf16 %v131_v54, %v127_v53  ;;  %v2450_v63 = vpack.c.bf16 %v133_v57, %v129_v55  ;;  %v135_v1 = vld [vmem:[#allocation5 + $0x140] sm:$0xff] }
  0x6a   :  { %2445 = vmatprep.subr.bf16.mxu1 %v2444_v43  ;;  %v142_v61 = vld [vmem:[#allocation5 + $0x178] sm:$0xff]  ;;  %v2068_v0 = vpack.c.bf16 %v140_v59, %v136_v58  ;;  %v139_v2 = vld [vmem:[#allocation5 + $0x160] sm:$0xff]  ;;  %v137_v3 = vld [vmem:[#allocation5 + $0x150] sm:$0xff] }
  0x6b   :  { %v2452_v4 = vpack.c.bf16 %v142_v61, %v138_v60  ;;  %v141_v5 = vld [vmem:[#allocation5 + $0x170] sm:$0xff]  ;;  %v144_v6 = vld [vmem:[#allocation5 + $0x188] sm:$0xff]  ;;  %v146_v8 = vld [vmem:[#allocation5 + $0x198] sm:$0xff]  ;;  %v2070_v10 = vpack.c.bf16 %v139_v2, %v135_v1 }
  0x6c   :  { %2063 = vmatpush1.bf16.msra.mxu0 %v2062_v50  ;;  %v148_v7 = vld [vmem:[#allocation5 + $0x1a8] sm:$0xff]  ;;  %v150_v9 = vld [vmem:[#allocation5 + $0x1b8] sm:$0xff]  ;;  %v2454_v11 = vpack.c.bf16 %v141_v5, %v137_v3  ;;  %v143_v13 = vld [vmem:[#allocation5 + $0x180] sm:$0xff] }
  0x6d   :  { %2447 = vmatpush1.bf16.msra.mxu1 %v2446_v51  ;;  %2065 = vmatprep.subr.bf16.mxu0 %v2064_v52  ;;  %v2072_v12 = vpack.c.bf16 %v148_v7, %v144_v6  ;;  %v147_v14 = vld [vmem:[#allocation5 + $0x1a0] sm:$0xff]  ;;  %v145_v15 = vld [vmem:[#allocation5 + $0x190] sm:$0xff]  ;;  %v2456_v16 = vpack.c.bf16 %v150_v9, %v146_v8  ;;  %v152_v18 = vld [vmem:[#allocation5 + $0x1c8] sm:$0xff] }
  0x6e   :  { %2449 = vmatprep.subr.bf16.mxu1 %v2448_v56  ;;  %v149_v17 = vld [vmem:[#allocation5 + $0x1b0] sm:$0xff]  ;;  %v156_v19 = vld [vmem:[#allocation5 + $0x1e8] sm:$0xff]  ;;  %v154_v20 = vld [vmem:[#allocation5 + $0x1d8] sm:$0xff]  ;;  %v2074_v22 = vpack.c.bf16 %v147_v14, %v143_v13 }
  0x6f   :  { %v158_v21 = vld [vmem:[#allocation5 + $0x1f8] sm:$0xff]  ;;  %v2458_v23 = vpack.c.bf16 %v149_v17, %v145_v15  ;;  %v2076_v24 = vpack.c.bf16 %v156_v19, %v152_v18  ;;  %v151_v25 = vld [vmem:[#allocation5 + $0x1c0] sm:$0xff]  ;;  %v153_v27 = vld [vmem:[#allocation5 + $0x1d0] sm:$0xff] }
  0x70   :  { %2067 = vmatpush1.bf16.msra.mxu0 %v2066_v62  ;;  %v155_v26 = vld [vmem:[#allocation5 + $0x1e0] sm:$0xff]  ;;  %v2460_v28 = vpack.c.bf16 %v158_v21, %v154_v20  ;;  %v157_v29 = vld [vmem:[#allocation5 + $0x1f0] sm:$0xff]  ;;  %v160_v30 = vld [vmem:[#allocation5 + $0x208] sm:$0xff] }
  0x71   :  { %2451 = vmatpush1.bf16.msra.mxu1 %v2450_v63  ;;  %2069 = vmatprep.subr.bf16.mxu0 %v2068_v0  ;;  %v164_v31 = vld [vmem:[#allocation5 + $0x228] sm:$0xff]  ;;  %v162_v32 = vld [vmem:[#allocation5 + $0x218] sm:$0xff]  ;;  %v2078_v34 = vpack.c.bf16 %v155_v26, %v151_v25  ;;  %v2462_v35 = vpack.c.bf16 %v157_v29, %v153_v27  ;;  %v159_v37 = vld [vmem:[#allocation5 + $0x200] sm:$0xff] }
  0x72   :  { %2453 = vmatprep.subr.bf16.mxu1 %v2452_v4  ;;  %v166_v33 = vld [vmem:[#allocation5 + $0x238] sm:$0xff]  ;;  %v2080_v36 = vpack.c.bf16 %v164_v31, %v160_v30  ;;  %v163_v38 = vld [vmem:[#allocation5 + $0x220] sm:$0xff]  ;;  %v161_v39 = vld [vmem:[#allocation5 + $0x210] sm:$0xff] }
  0x73   :  { %v2464_v40 = vpack.c.bf16 %v166_v33, %v162_v32  ;;  %v165_v41 = vld [vmem:[#allocation5 + $0x230] sm:$0xff]  ;;  %v168_v42 = vld [vmem:[#allocation5 + $0x248] sm:$0xff]  ;;  %v170_v44 = vld [vmem:[#allocation5 + $0x258] sm:$0xff]  ;;  %v2082_v46 = vpack.c.bf16 %v163_v38, %v159_v37 }
  0x74   :  { %2071 = vmatpush1.bf16.msra.mxu0 %v2070_v10  ;;  %v172_v43 = vld [vmem:[#allocation5 + $0x268] sm:$0xff]  ;;  %v174_v45 = vld [vmem:[#allocation5 + $0x278] sm:$0xff]  ;;  %v2466_v47 = vpack.c.bf16 %v165_v41, %v161_v39  ;;  %v167_v49 = vld [vmem:[#allocation5 + $0x240] sm:$0xff] }
  0x75   :  { %2455 = vmatpush1.bf16.msra.mxu1 %v2454_v11  ;;  %2073 = vmatprep.subr.bf16.mxu0 %v2072_v12  ;;  %v2084_v48 = vpack.c.bf16 %v172_v43, %v168_v42  ;;  %v171_v50 = vld [vmem:[#allocation5 + $0x260] sm:$0xff]  ;;  %v169_v51 = vld [vmem:[#allocation5 + $0x250] sm:$0xff]  ;;  %v2468_v52 = vpack.c.bf16 %v174_v45, %v170_v44  ;;  %v176_v54 = vld [vmem:[#allocation5 + $0x288] sm:$0xff] }
  0x76   :  { %2457 = vmatprep.subr.bf16.mxu1 %v2456_v16  ;;  %v173_v53 = vld [vmem:[#allocation5 + $0x270] sm:$0xff]  ;;  %v180_v55 = vld [vmem:[#allocation5 + $0x2a8] sm:$0xff]  ;;  %v178_v56 = vld [vmem:[#allocation5 + $0x298] sm:$0xff]  ;;  %v2086_v58 = vpack.c.bf16 %v171_v50, %v167_v49 }
  0x77   :  { %v182_v57 = vld [vmem:[#allocation5 + $0x2b8] sm:$0xff]  ;;  %v2470_v59 = vpack.c.bf16 %v173_v53, %v169_v51  ;;  %v2088_v60 = vpack.c.bf16 %v180_v55, %v176_v54  ;;  %v175_v61 = vld [vmem:[#allocation5 + $0x280] sm:$0xff]  ;;  %v177_v63 = vld [vmem:[#allocation5 + $0x290] sm:$0xff] }
  0x78   :  { %2075 = vmatpush1.bf16.msra.mxu0 %v2074_v22  ;;  %v179_v62 = vld [vmem:[#allocation5 + $0x2a0] sm:$0xff]  ;;  %v2472_v0 = vpack.c.bf16 %v182_v57, %v178_v56  ;;  %v181_v1 = vld [vmem:[#allocation5 + $0x2b0] sm:$0xff]  ;;  %v184_v2 = vld [vmem:[#allocation5 + $0x2c8] sm:$0xff] }
  0x79   :  { %2459 = vmatpush1.bf16.msra.mxu1 %v2458_v23  ;;  %2077 = vmatprep.subr.bf16.mxu0 %v2076_v24  ;;  %v188_v3 = vld [vmem:[#allocation5 + $0x2e8] sm:$0xff]  ;;  %v186_v4 = vld [vmem:[#allocation5 + $0x2d8] sm:$0xff]  ;;  %v2090_v6 = vpack.c.bf16 %v179_v62, %v175_v61  ;;  %v183_v7 = vld [vmem:[#allocation5 + $0x2c0] sm:$0xff]  ;;  %v2474_v8 = vpack.c.bf16 %v181_v1, %v177_v63 }
  0x7a   :  { %2461 = vmatprep.subr.bf16.mxu1 %v2460_v28  ;;  %v190_v5 = vld [vmem:[#allocation5 + $0x2f8] sm:$0xff]  ;;  %v2092_v9 = vpack.c.bf16 %v188_v3, %v184_v2  ;;  %v187_v10 = vld [vmem:[#allocation5 + $0x2e0] sm:$0xff]  ;;  %v185_v11 = vld [vmem:[#allocation5 + $0x2d0] sm:$0xff] }
  0x7b   :  { %v189_v12 = vld [vmem:[#allocation5 + $0x2f0] sm:$0xff]  ;;  %v2476_v13 = vpack.c.bf16 %v190_v5, %v186_v4  ;;  %v192_v14 = vld [vmem:[#allocation5 + $0x308] sm:$0xff]  ;;  %v194_v17 = vld [vmem:[#allocation5 + $0x318] sm:$0xff]  ;;  %v2094_v19 = vpack.c.bf16 %v187_v10, %v183_v7 }
  0x7c   :  { %2079 = vmatpush1.bf16.msra.mxu0 %v2078_v34  ;;  %v196_v15 = vld [vmem:[#allocation5 + $0x328] sm:$0xff]  ;;  %v198_v18 = vld [vmem:[#allocation5 + $0x338] sm:$0xff]  ;;  %v2478_v20 = vpack.c.bf16 %v189_v12, %v185_v11  ;;  %v191_v22 = vld [vmem:[#allocation5 + $0x300] sm:$0xff] }
  0x7d   :  { %2463 = vmatpush1.bf16.msra.mxu1 %v2462_v35  ;;  %2081 = vmatprep.subr.bf16.mxu0 %v2080_v36  ;;  %v84_v16 = vld [vmem:[#allocation2 + $0x8] sm:$0xff]  ;;  %v2096_v21 = vpack.c.bf16 %v196_v15, %v192_v14  ;;  %v195_v23 = vld [vmem:[#allocation5 + $0x320] sm:$0xff]  ;;  %v193_v24 = vld [vmem:[#allocation5 + $0x310] sm:$0xff]  ;;  %v2480_v25 = vpack.c.bf16 %v198_v18, %v194_v17 }
  0x7e   :  { %2465 = vmatprep.subr.bf16.mxu1 %v2464_v40  ;;  %949 = vmatprep.mubr.f32.mxu0 %v84_v16  ;;  %v197_v26 = vld [vmem:[#allocation5 + $0x330] sm:$0xff]  ;;  %v200_v27 = vld [vmem:[#allocation5 + $0x348] sm:$0xff]  ;;  %v202_v29 = vld [vmem:[#allocation5 + $0x358] sm:$0xff]  ;;  %v2098_v31 = vpack.c.bf16 %v195_v23, %v191_v22 }
  0x7f   :  { %1375 = vmatprep.mubr.f32.mxu1 %v84_v16  ;;  %v204_v28 = vld [vmem:[#allocation5 + $0x368] sm:$0xff]  ;;  %v206_v30 = vld [vmem:[#allocation5 + $0x378] sm:$0xff]  ;;  %v2482_v32 = vpack.c.bf16 %v197_v26, %v193_v24  ;;  %v199_v34 = vld [vmem:[#allocation5 + $0x340] sm:$0xff] }
  0x80   :  { %2083 = vmatpush1.bf16.msra.mxu0 %v2082_v46  ;;  %v2100_v33 = vpack.c.bf16 %v204_v28, %v200_v27  ;;  %v203_v35 = vld [vmem:[#allocation5 + $0x360] sm:$0xff]  ;;  %v201_v36 = vld [vmem:[#allocation5 + $0x350] sm:$0xff]  ;;  %v2484_v37 = vpack.c.bf16 %v206_v30, %v202_v29  ;;  %v208_v39 = vld [vmem:[#allocation5 + $0x388] sm:$0xff] }
  0x81   :  { %2467 = vmatpush1.bf16.msra.mxu1 %v2466_v47  ;;  %2085 = vmatprep.subr.bf16.mxu0 %v2084_v48  ;;  %v205_v38 = vld [vmem:[#allocation5 + $0x370] sm:$0xff]  ;;  %v212_v40 = vld [vmem:[#allocation5 + $0x3a8] sm:$0xff]  ;;  %v210_v41 = vld [vmem:[#allocation5 + $0x398] sm:$0xff]  ;;  %v2102_v43 = vpack.c.bf16 %v203_v35, %v199_v34 }
  0x82   :  { %2469 = vmatprep.subr.bf16.mxu1 %v2468_v52  ;;  %v214_v42 = vld [vmem:[#allocation5 + $0x3b8] sm:$0xff]  ;;  %v2486_v44 = vpack.c.bf16 %v205_v38, %v201_v36  ;;  %v2104_v45 = vpack.c.bf16 %v212_v40, %v208_v39  ;;  %v207_v46 = vld [vmem:[#allocation5 + $0x380] sm:$0xff]  ;;  %v209_v48 = vld [vmem:[#allocation5 + $0x390] sm:$0xff] }
  0x83   :  { %v211_v47 = vld [vmem:[#allocation5 + $0x3a0] sm:$0xff]  ;;  %v2488_v49 = vpack.c.bf16 %v214_v42, %v210_v41  ;;  %v213_v50 = vld [vmem:[#allocation5 + $0x3b0] sm:$0xff]  ;;  %v216_v51 = vld [vmem:[#allocation5 + $0x3c8] sm:$0xff] }
  0x84   :  { %2087 = vmatpush1.bf16.msra.mxu0 %v2086_v58  ;;  %v220_v52 = vld [vmem:[#allocation5 + $0x3e8] sm:$0xff]  ;;  %v218_v53 = vld [vmem:[#allocation5 + $0x3d8] sm:$0xff]  ;;  %v2106_v55 = vpack.c.bf16 %v211_v47, %v207_v46  ;;  %v2490_v56 = vpack.c.bf16 %v213_v50, %v209_v48  ;;  %v215_v58 = vld [vmem:[#allocation5 + $0x3c0] sm:$0xff] }
  0x85   :  { %2471 = vmatpush1.bf16.msra.mxu1 %v2470_v59  ;;  %2089 = vmatprep.subr.bf16.mxu0 %v2088_v60  ;;  %v222_v54 = vld [vmem:[#allocation5 + $0x3f8] sm:$0xff]  ;;  %v2108_v57 = vpack.c.bf16 %v220_v52, %v216_v51  ;;  %v219_v59 = vld [vmem:[#allocation5 + $0x3e0] sm:$0xff]  ;;  %v217_v60 = vld [vmem:[#allocation5 + $0x3d0] sm:$0xff] }
  0x86   :  { %2473 = vmatprep.subr.bf16.mxu1 %v2472_v0  ;;  %v2492_v61 = vpack.c.bf16 %v222_v54, %v218_v53  ;;  %v221_v62 = vld [vmem:[#allocation5 + $0x3f0] sm:$0xff]  ;;  %v224_v63 = vld [vmem:[#allocation5 + $0x408] sm:$0xff]  ;;  %v226_v1 = vld [vmem:[#allocation5 + $0x418] sm:$0xff]  ;;  %v2110_v3 = vpack.c.bf16 %v219_v59, %v215_v58 }
  0x87   :  { %v228_v0 = vld [vmem:[#allocation5 + $0x428] sm:$0xff]  ;;  %v230_v2 = vld [vmem:[#allocation5 + $0x438] sm:$0xff]  ;;  %v2494_v4 = vpack.c.bf16 %v221_v62, %v217_v60  ;;  %v227_v7 = vld [vmem:[#allocation5 + $0x420] sm:$0xff] }
  0x88   :  { %2091 = vmatpush1.bf16.msra.mxu0 %v2090_v6  ;;  %v2112_v5 = vpack.c.bf16 %v228_v0, %v224_v63  ;;  %v223_v6 = vld [vmem:[#allocation5 + $0x400] sm:$0xff]  ;;  %v229_v10 = vld [vmem:[#allocation5 + $0x430] sm:$0xff]  ;;  %v232_v11 = vld [vmem:[#allocation5 + $0x448] sm:$0xff] }
  0x89   :  { %2475 = vmatpush1.bf16.msra.mxu1 %v2474_v8  ;;  %2093 = vmatprep.subr.bf16.mxu0 %v2092_v9  ;;  %v225_v8 = vld [vmem:[#allocation5 + $0x410] sm:$0xff]  ;;  %v2496_v9 = vpack.c.bf16 %v230_v2, %v226_v1  ;;  %v236_v12 = vld [vmem:[#allocation5 + $0x468] sm:$0xff]  ;;  %v238_v14 = vld [vmem:[#allocation5 + $0x478] sm:$0xff]  ;;  %v2114_v16 = vpack.c.bf16 %v227_v7, %v223_v6 }
  0x8a   :  { %2477 = vmatprep.subr.bf16.mxu1 %v2476_v13  ;;  %v234_v13 = vld [vmem:[#allocation5 + $0x458] sm:$0xff]  ;;  %v83_v15 = vld [vmem:[#allocation2] sm:$0xff]  ;;  %v2498_v17 = vpack.c.bf16 %v229_v10, %v225_v8  ;;  %v2116_v18 = vpack.c.bf16 %v236_v12, %v232_v11  ;;  %v237_v23 = vld [vmem:[#allocation5 + $0x470] sm:$0xff] }
  0x8b   :  { %v2500_v22 = vpack.c.bf16 %v238_v14, %v234_v13  ;;  %v240_v24 = vld [vmem:[#allocation5 + $0x488] sm:$0xff]  ;;  %v242_v26 = vld [vmem:[#allocation5 + $0x498] sm:$0xff]  ;;  %v245_v35 = vld [vmem:[#allocation5 + $0x4b0] sm:$0xff] }
  0x8c   :  { %2095 = vmatpush1.bf16.msra.mxu0 %v2094_v19  ;;  %v231_v19 = vld [vmem:[#allocation5 + $0x440] sm:$0xff]  ;;  %v246_v27 = vld [vmem:[#allocation5 + $0x4b8] sm:$0xff]  ;;  %v248_v36 = vld [vmem:[#allocation5 + $0x4c8] sm:$0xff] }
  0x8d   :  { %2479 = vmatpush1.bf16.msra.mxu1 %v2478_v20  ;;  %2097 = vmatprep.subr.bf16.mxu0 %v2096_v21  ;;  %v235_v20 = vld [vmem:[#allocation5 + $0x460] sm:$0xff]  ;;  %v233_v21 = vld [vmem:[#allocation5 + $0x450] sm:$0xff]  ;;  %v2504_v34 = vpack.c.bf16 %v246_v27, %v242_v26  ;;  %v250_v38 = vld [vmem:[#allocation5 + $0x4d8] sm:$0xff] }
  0x8e   :  { %2481 = vmatprep.subr.bf16.mxu1 %v2480_v25  ;;  %v244_v25 = vld [vmem:[#allocation5 + $0x4a8] sm:$0xff]  ;;  %v2118_v28 = vpack.c.bf16 %v235_v20, %v231_v19  ;;  %v2502_v29 = vpack.c.bf16 %v237_v23, %v233_v21  ;;  %v254_v39 = vld [vmem:[#allocation5 + $0x4f8] sm:$0xff]  ;;  %v253_v47 = vld [vmem:[#allocation5 + $0x4f0] sm:$0xff] }
  0x8f   :  { %v2120_v30 = vpack.c.bf16 %v244_v25, %v240_v24  ;;  %v2508_v46 = vpack.c.bf16 %v254_v39, %v250_v38  ;;  %v256_v48 = vld [vmem:[#allocation5 + $0x508] sm:$0xff]  ;;  %v258_v50 = vld [vmem:[#allocation5 + $0x518] sm:$0xff]  ;;  %v261_v59 = vld [vmem:[#allocation5 + $0x530] sm:$0xff] }
  0x90   :  { %2099 = vmatpush1.bf16.msra.mxu0 %v2098_v31  ;;  %v239_v31 = vld [vmem:[#allocation5 + $0x480] sm:$0xff]  ;;  %v262_v51 = vld [vmem:[#allocation5 + $0x538] sm:$0xff]  ;;  %v264_v60 = vld [vmem:[#allocation5 + $0x548] sm:$0xff] }
  0x91   :  { %2483 = vmatpush1.bf16.msra.mxu1 %v2482_v32  ;;  %2101 = vmatprep.subr.bf16.mxu0 %v2100_v33  ;;  %v243_v32 = vld [vmem:[#allocation5 + $0x4a0] sm:$0xff]  ;;  %v241_v33 = vld [vmem:[#allocation5 + $0x490] sm:$0xff]  ;;  %v2512_v58 = vpack.c.bf16 %v262_v51, %v258_v50  ;;  %v266_v62 = vld [vmem:[#allocation5 + $0x558] sm:$0xff] }
  0x92   :  { %2485 = vmatprep.subr.bf16.mxu1 %v2484_v37  ;;  %v252_v37 = vld [vmem:[#allocation5 + $0x4e8] sm:$0xff]  ;;  %v2122_v40 = vpack.c.bf16 %v243_v32, %v239_v31  ;;  %v2506_v41 = vpack.c.bf16 %v245_v35, %v241_v33  ;;  %v270_v63 = vld [vmem:[#allocation5 + $0x578] sm:$0xff]  ;;  %v269_v7 = vld [vmem:[#allocation5 + $0x570] sm:$0xff] }
  0x93   :  { %v2124_v42 = vpack.c.bf16 %v252_v37, %v248_v36  ;;  %v2516_v6 = vpack.c.bf16 %v270_v63, %v266_v62  ;;  %v272_v8 = vld [vmem:[#allocation5 + $0x588] sm:$0xff]  ;;  %v274_v10 = vld [vmem:[#allocation5 + $0x598] sm:$0xff]  ;;  %v271_v13 = vld [vmem:[#allocation5 + $0x580] sm:$0xff] }
  0x94   :  { %2103 = vmatpush1.bf16.msra.mxu0 %v2102_v43  ;;  %v247_v43 = vld [vmem:[#allocation5 + $0x4c0] sm:$0xff]  ;;  %v278_v11 = vld [vmem:[#allocation5 + $0x5b8] sm:$0xff]  ;;  %v280_v20 = vld [vmem:[#allocation5 + $0x5c8] sm:$0xff] }
  0x95   :  { %2487 = vmatpush1.bf16.msra.mxu1 %v2486_v44  ;;  %2105 = vmatprep.subr.bf16.mxu0 %v2104_v45  ;;  %v251_v44 = vld [vmem:[#allocation5 + $0x4e0] sm:$0xff]  ;;  %v249_v45 = vld [vmem:[#allocation5 + $0x4d0] sm:$0xff]  ;;  %v2520_v19 = vpack.c.bf16 %v278_v11, %v274_v10  ;;  %v284_v21 = vld [vmem:[#allocation5 + $0x5e8] sm:$0xff] }
  0x96   :  { %2489 = vmatprep.subr.bf16.mxu1 %v2488_v49  ;;  %v260_v49 = vld [vmem:[#allocation5 + $0x528] sm:$0xff]  ;;  %v2126_v52 = vpack.c.bf16 %v251_v44, %v247_v43  ;;  %v2510_v53 = vpack.c.bf16 %v253_v47, %v249_v45  ;;  %v282_v23 = vld [vmem:[#allocation5 + $0x5d8] sm:$0xff]  ;;  %v2140_v27 = vpack.c.bf16 %v284_v21, %v280_v20  ;;  %v285_v32 = vld [vmem:[#allocation5 + $0x5f0] sm:$0xff] }
  0x97   :  { %v2128_v54 = vpack.c.bf16 %v260_v49, %v256_v48  ;;  %v286_v24 = vld [vmem:[#allocation5 + $0x5f8] sm:$0xff]  ;;  %v288_v33 = vld [vmem:[#allocation5 + $0x608] sm:$0xff]  ;;  %v293_v44 = vld [vmem:[#allocation5 + $0x630] sm:$0xff] }
  0x98   :  { %2107 = vmatpush1.bf16.msra.mxu0 %v2106_v55  ;;  %v255_v55 = vld [vmem:[#allocation5 + $0x500] sm:$0xff]  ;;  %v2524_v31 = vpack.c.bf16 %v286_v24, %v282_v23  ;;  %v290_v35 = vld [vmem:[#allocation5 + $0x618] sm:$0xff]  ;;  %v296_v45 = vld [vmem:[#allocation5 + $0x648] sm:$0xff] }
  0x99   :  { %2491 = vmatpush1.bf16.msra.mxu1 %v2490_v56  ;;  %2109 = vmatprep.subr.bf16.mxu0 %v2108_v57  ;;  %v259_v56 = vld [vmem:[#allocation5 + $0x520] sm:$0xff]  ;;  %v257_v57 = vld [vmem:[#allocation5 + $0x510] sm:$0xff]  ;;  %v294_v36 = vld [vmem:[#allocation5 + $0x638] sm:$0xff] }
  0x9a   :  { %2493 = vmatprep.subr.bf16.mxu1 %v2492_v61  ;;  %v268_v61 = vld [vmem:[#allocation5 + $0x568] sm:$0xff]  ;;  %v2130_v0 = vpack.c.bf16 %v259_v56, %v255_v55  ;;  %v2514_v1 = vpack.c.bf16 %v261_v59, %v257_v57  ;;  %v2528_v43 = vpack.c.bf16 %v294_v36, %v290_v35  ;;  %v298_v47 = vld [vmem:[#allocation5 + $0x658] sm:$0xff]  ;;  %v301_v56 = vld [vmem:[#allocation5 + $0x670] sm:$0xff] }
  0x9b   :  { %v2132_v2 = vpack.c.bf16 %v268_v61, %v264_v60  ;;  %v302_v48 = vld [vmem:[#allocation5 + $0x678] sm:$0xff]  ;;  %v304_v57 = vld [vmem:[#allocation5 + $0x688] sm:$0xff]  ;;  %v319_v24 = vld [vmem:[#allocation5 + $0x700] sm:$0xff] }
  0x9c   :  { %2111 = vmatpush1.bf16.msra.mxu0 %v2110_v3  ;;  %v263_v3 = vld [vmem:[#allocation5 + $0x540] sm:$0xff]  ;;  %v2532_v55 = vpack.c.bf16 %v302_v48, %v298_v47  ;;  %v306_v59 = vld [vmem:[#allocation5 + $0x698] sm:$0xff] }
  0x9d   :  { %2495 = vmatpush1.bf16.msra.mxu1 %v2494_v4  ;;  %2113 = vmatprep.subr.bf16.mxu0 %v2112_v5  ;;  %v267_v4 = vld [vmem:[#allocation5 + $0x560] sm:$0xff]  ;;  %v265_v5 = vld [vmem:[#allocation5 + $0x550] sm:$0xff]  ;;  %v310_v60 = vld [vmem:[#allocation5 + $0x6b8] sm:$0xff] }
  0x9e   :  { %2497 = vmatprep.subr.bf16.mxu1 %v2496_v9  ;;  %v276_v9 = vld [vmem:[#allocation5 + $0x5a8] sm:$0xff]  ;;  %v2134_v12 = vpack.c.bf16 %v267_v4, %v263_v3  ;;  %v2518_v14 = vpack.c.bf16 %v269_v7, %v265_v5  ;;  %v2536_v3 = vpack.c.bf16 %v310_v60, %v306_v59  ;;  %v309_v4 = vld [vmem:[#allocation5 + $0x6b0] sm:$0xff]  ;;  %v314_v7 = vld [vmem:[#allocation5 + $0x6d8] sm:$0xff] }
  0x9f   :  { %950 = vmatmul.mubr.f32.vlgmr.msra.gmra.mrb[0].mxu0 %v83_v15  ;;  %v312_v5 = vld [vmem:[#allocation5 + $0x6c8] sm:$0xff]  ;;  %v326_v20 = vld [vmem:[#allocation5 + $0x738] sm:$0xff]  ;;  %v327_v36 = vld [vmem:[#allocation5 + $0x740] sm:$0xff] }
  0xa0   :  { %2115 = vmatpush1.bf16.msra.mxu0 %v2114_v16  ;;  %1376 = vmatmul.mubr.f32.vlgmr.msra.gmra.mrb[0].mxu1 %v83_v15  ;;  %v2136_v15 = vpack.c.bf16 %v276_v9, %v272_v8  ;;  %v275_v16 = vld [vmem:[#allocation5 + $0x5a0] sm:$0xff]  ;;  %v318_v8 = vld [vmem:[#allocation5 + $0x6f8] sm:$0xff] }
  0xa1   :  { %2499 = vmatpush1.bf16.msra.mxu1 %v2498_v17  ;;  %2117 = vmatprep.subr.bf16.mxu0 %v2116_v18  ;;  %v273_v17 = vld [vmem:[#allocation5 + $0x590] sm:$0xff]  ;;  %v2138_v25 = vpack.c.bf16 %v275_v16, %v271_v13  ;;  %v315_v13 = vld [vmem:[#allocation5 + $0x6e0] sm:$0xff] }
  0xa2   :  { %2501 = vmatprep.subr.bf16.mxu1 %v2500_v22  ;;  %v277_v18 = vld [vmem:[#allocation5 + $0x5b0] sm:$0xff]  ;;  %v86_v22 = vld [vmem:[#allocation2 + $0x18] sm:$0xff]  ;;  %v335_v48 = vld [vmem:[#allocation5 + $0x780] sm:$0xff] }
  0xa3   :  { %1020 = vmatprep.mubr.f32.mxu0 %v86_v22  ;;  %1446 = vmatprep.mubr.f32.mxu1 %v86_v22  ;;  %v2522_v26 = vpack.c.bf16 %v277_v18, %v273_v17  ;;  %v317_v16 = vld [vmem:[#allocation5 + $0x6f0] sm:$0xff]  ;;  %v320_v17 = vld [vmem:[#allocation5 + $0x708] sm:$0xff]  ;;  %v343_v60 = vld [vmem:[#allocation5 + $0x7c0] sm:$0xff] }
  0xa4   :  { %2119 = vmatpush1.bf16.msra.mxu0 %v2118_v28  ;;  %v279_v28 = vld [vmem:[#allocation5 + $0x5c0] sm:$0xff]  ;;  %v324_v18 = vld [vmem:[#allocation5 + $0x728] sm:$0xff] }
  0xa5   :  { %2503 = vmatpush1.bf16.msra.mxu1 %v2502_v29  ;;  %2121 = vmatprep.subr.bf16.mxu0 %v2120_v30  ;;  %v283_v29 = vld [vmem:[#allocation5 + $0x5e0] sm:$0xff]  ;;  %v281_v30 = vld [vmem:[#allocation5 + $0x5d0] sm:$0xff]  ;;  %v2160_v23 = vpack.c.bf16 %v324_v18, %v320_v17 }
  0xa6   :  { %2505 = vmatprep.subr.bf16.mxu1 %v2504_v34  ;;  %v292_v34 = vld [vmem:[#allocation5 + $0x628] sm:$0xff]  ;;  %v2142_v37 = vpack.c.bf16 %v283_v29, %v279_v28  ;;  %v2526_v38 = vpack.c.bf16 %v285_v32, %v281_v30  ;;  %v325_v28 = vld [vmem:[#allocation5 + $0x730] sm:$0xff]  ;;  %v334_v32 = vld [vmem:[#allocation5 + $0x778] sm:$0xff] }
  0xa7   :  { %v2144_v39 = vpack.c.bf16 %v292_v34, %v288_v33  ;;  %v328_v29 = vld [vmem:[#allocation5 + $0x748] sm:$0xff]  ;;  %v85_v17 = vld [vmem:[#allocation2 + $0x10] sm:$0xff] }
  0xa8   :  { %2123 = vmatpush1.bf16.msra.mxu0 %v2122_v40  ;;  %v287_v40 = vld [vmem:[#allocation5 + $0x600] sm:$0xff]  ;;  %v332_v30 = vld [vmem:[#allocation5 + $0x768] sm:$0xff] }
  0xa9   :  { %2507 = vmatpush1.bf16.msra.mxu1 %v2506_v41  ;;  %2125 = vmatprep.subr.bf16.mxu0 %v2124_v42  ;;  %v291_v41 = vld [vmem:[#allocation5 + $0x620] sm:$0xff]  ;;  %v289_v42 = vld [vmem:[#allocation5 + $0x610] sm:$0xff]  ;;  %v2164_v35 = vpack.c.bf16 %v332_v30, %v328_v29  ;;  %v374_v29 = vld [vmem:[#allocation5 + $0x8b8] sm:$0xff] }
  0xaa   :  { %2509 = vmatprep.subr.bf16.mxu1 %v2508_v46  ;;  %v300_v46 = vld [vmem:[#allocation5 + $0x668] sm:$0xff]  ;;  %v2146_v49 = vpack.c.bf16 %v291_v41, %v287_v40  ;;  %v2530_v50 = vpack.c.bf16 %v293_v44, %v289_v42  ;;  %v333_v40 = vld [vmem:[#allocation5 + $0x770] sm:$0xff]  ;;  %v342_v44 = vld [vmem:[#allocation5 + $0x7b8] sm:$0xff] }
  0xab   :  { %v2148_v51 = vpack.c.bf16 %v300_v46, %v296_v45  ;;  %v336_v41 = vld [vmem:[#allocation5 + $0x788] sm:$0xff] }
  0xac   :  { %2127 = vmatpush1.bf16.msra.mxu0 %v2126_v52  ;;  %v295_v52 = vld [vmem:[#allocation5 + $0x640] sm:$0xff]  ;;  %v340_v42 = vld [vmem:[#allocation5 + $0x7a8] sm:$0xff] }
  0xad   :  { %2511 = vmatpush1.bf16.msra.mxu1 %v2510_v53  ;;  %2129 = vmatprep.subr.bf16.mxu0 %v2128_v54  ;;  %v299_v53 = vld [vmem:[#allocation5 + $0x660] sm:$0xff]  ;;  %v297_v54 = vld [vmem:[#allocation5 + $0x650] sm:$0xff]  ;;  %v2168_v47 = vpack.c.bf16 %v340_v42, %v336_v41  ;;  %v88_v30 = vld [vmem:[#allocation2 + $0x28] sm:$0xff] }
  0xae   :  { %2513 = vmatprep.subr.bf16.mxu1 %v2512_v58  ;;  %v308_v58 = vld [vmem:[#allocation5 + $0x6a8] sm:$0xff]  ;;  %v2150_v61 = vpack.c.bf16 %v299_v53, %v295_v52  ;;  %v2534_v62 = vpack.c.bf16 %v301_v56, %v297_v54  ;;  %v341_v52 = vld [vmem:[#allocation5 + $0x7b0] sm:$0xff]  ;;  %v350_v56 = vld [vmem:[#allocation5 + $0x7f8] sm:$0xff] }
  0xaf   :  { %v2152_v63 = vpack.c.bf16 %v308_v58, %v304_v57  ;;  %v344_v53 = vld [vmem:[#allocation5 + $0x7c8] sm:$0xff]  ;;  %v378_v41 = vld [vmem:[#allocation5 + $0x8d8] sm:$0xff] }
  0xb0   :  { %2131 = vmatpush1.bf16.msra.mxu0 %v2130_v0  ;;  %v303_v0 = vld [vmem:[#allocation5 + $0x680] sm:$0xff]  ;;  %v348_v54 = vld [vmem:[#allocation5 + $0x7e8] sm:$0xff]  ;;  %v382_v42 = vld [vmem:[#allocation5 + $0x8f8] sm:$0xff] }
  0xb1   :  { %2515 = vmatpush1.bf16.msra.mxu1 %v2514_v1  ;;  %2133 = vmatprep.subr.bf16.mxu0 %v2132_v2  ;;  %v307_v1 = vld [vmem:[#allocation5 + $0x6a0] sm:$0xff]  ;;  %v305_v2 = vld [vmem:[#allocation5 + $0x690] sm:$0xff]  ;;  %v2172_v59 = vpack.c.bf16 %v348_v54, %v344_v53  ;;  %v386_v53 = vld [vmem:[#allocation5 + $0x918] sm:$0xff] }
  0xb2   :  { %2517 = vmatprep.subr.bf16.mxu1 %v2516_v6  ;;  %v316_v6 = vld [vmem:[#allocation5 + $0x6e8] sm:$0xff]  ;;  %v2154_v9 = vpack.c.bf16 %v307_v1, %v303_v0  ;;  %v2538_v10 = vpack.c.bf16 %v309_v4, %v305_v2  ;;  %v349_v0 = vld [vmem:[#allocation5 + $0x7f0] sm:$0xff]  ;;  %v358_v4 = vld [vmem:[#allocation5 + $0x838] sm:$0xff] }
  0xb3   :  { %v2156_v11 = vpack.c.bf16 %v316_v6, %v312_v5  ;;  %v352_v1 = vld [vmem:[#allocation5 + $0x808] sm:$0xff]  ;;  %v390_v54 = vld [vmem:[#allocation5 + $0x938] sm:$0xff] }
  0xb4   :  { %2135 = vmatpush1.bf16.msra.mxu0 %v2134_v12  ;;  %v311_v12 = vld [vmem:[#allocation5 + $0x6c0] sm:$0xff]  ;;  %v356_v2 = vld [vmem:[#allocation5 + $0x828] sm:$0xff] }
  0xb5   :  { %2519 = vmatpush1.bf16.msra.mxu1 %v2518_v14  ;;  %2137 = vmatprep.subr.bf16.mxu0 %v2136_v15  ;;  %v313_v14 = vld [vmem:[#allocation5 + $0x6d0] sm:$0xff]  ;;  %v2540_v15 = vpack.c.bf16 %v318_v8, %v314_v7  ;;  %v2158_v21 = vpack.c.bf16 %v315_v13, %v311_v12  ;;  %v2176_v7 = vpack.c.bf16 %v356_v2, %v352_v1  ;;  %v351_v8 = vld [vmem:[#allocation5 + $0x800] sm:$0xff]  ;;  %v360_v13 = vld [vmem:[#allocation5 + $0x848] sm:$0xff] }
  0xb6   :  { %2521 = vmatprep.subr.bf16.mxu1 %v2520_v19  ;;  %v322_v19 = vld [vmem:[#allocation5 + $0x718] sm:$0xff]  ;;  %v2542_v22 = vpack.c.bf16 %v317_v16, %v313_v14  ;;  %v357_v12 = vld [vmem:[#allocation5 + $0x830] sm:$0xff]  ;;  %v364_v14 = vld [vmem:[#allocation5 + $0x868] sm:$0xff] }
  0xb7   :  { %v366_v16 = vld [vmem:[#allocation5 + $0x878] sm:$0xff] }
  0xb8   :  { %2139 = vmatpush1.bf16.msra.mxu0 %v2138_v25  ;;  %v323_v25 = vld [vmem:[#allocation5 + $0x720] sm:$0xff]  ;;  %v394_v1 = vld [vmem:[#allocation5 + $0x958] sm:$0xff] }
  0xb9   :  { %2523 = vmatpush1.bf16.msra.mxu1 %v2522_v26  ;;  %2141 = vmatprep.subr.bf16.mxu0 %v2140_v27  ;;  %v321_v26 = vld [vmem:[#allocation5 + $0x710] sm:$0xff]  ;;  %v2544_v27 = vpack.c.bf16 %v326_v20, %v322_v19  ;;  %v2162_v33 = vpack.c.bf16 %v323_v25, %v319_v24  ;;  %v2180_v20 = vpack.c.bf16 %v364_v14, %v360_v13  ;;  %v398_v2 = vld [vmem:[#allocation5 + $0x978] sm:$0xff] }
  0xba   :  { %2525 = vmatprep.subr.bf16.mxu1 %v2524_v31  ;;  %v330_v31 = vld [vmem:[#allocation5 + $0x758] sm:$0xff]  ;;  %v2546_v34 = vpack.c.bf16 %v325_v28, %v321_v26  ;;  %v365_v25 = vld [vmem:[#allocation5 + $0x870] sm:$0xff]  ;;  %v368_v26 = vld [vmem:[#allocation5 + $0x888] sm:$0xff] }
  0xbb   :  { %v370_v28 = vld [vmem:[#allocation5 + $0x898] sm:$0xff] }
  0xbc   :  { %2143 = vmatpush1.bf16.msra.mxu0 %v2142_v37  ;;  %v331_v37 = vld [vmem:[#allocation5 + $0x760] sm:$0xff]  ;;  %v402_v13 = vld [vmem:[#allocation5 + $0x998] sm:$0xff] }
  0xbd   :  { %2527 = vmatpush1.bf16.msra.mxu1 %v2526_v38  ;;  %2145 = vmatprep.subr.bf16.mxu0 %v2144_v39  ;;  %v329_v38 = vld [vmem:[#allocation5 + $0x750] sm:$0xff]  ;;  %v2548_v39 = vpack.c.bf16 %v334_v32, %v330_v31  ;;  %v2166_v45 = vpack.c.bf16 %v331_v37, %v327_v36  ;;  %v2568_v37 = vpack.c.bf16 %v374_v29, %v370_v28  ;;  %v406_v14 = vld [vmem:[#allocation5 + $0x9b8] sm:$0xff] }
  0xbe   :  { %2529 = vmatprep.subr.bf16.mxu1 %v2528_v43  ;;  %v338_v43 = vld [vmem:[#allocation5 + $0x798] sm:$0xff]  ;;  %v2550_v46 = vpack.c.bf16 %v333_v40, %v329_v38  ;;  %v369_v36 = vld [vmem:[#allocation5 + $0x890] sm:$0xff]  ;;  %v380_v40 = vld [vmem:[#allocation5 + $0x8e8] sm:$0xff] }
  0xbf   :  { %v373_v38 = vld [vmem:[#allocation5 + $0x8b0] sm:$0xff] }
  0xc0   :  { %2147 = vmatpush1.bf16.msra.mxu0 %v2146_v49  ;;  %v339_v49 = vld [vmem:[#allocation5 + $0x7a0] sm:$0xff] }
  0xc1   :  { %2531 = vmatpush1.bf16.msra.mxu1 %v2530_v50  ;;  %2149 = vmatprep.subr.bf16.mxu0 %v2148_v51  ;;  %v337_v50 = vld [vmem:[#allocation5 + $0x790] sm:$0xff]  ;;  %v2552_v51 = vpack.c.bf16 %v342_v44, %v338_v43  ;;  %v2170_v57 = vpack.c.bf16 %v339_v49, %v335_v48  ;;  %v2570_v44 = vpack.c.bf16 %v373_v38, %v369_v36  ;;  %v420_v36 = vld [vmem:[#allocation5 + $0xa28] sm:$0xff]  ;;  %v422_v38 = vld [vmem:[#allocation5 + $0xa38] sm:$0xff] }
  0xc2   :  { %2533 = vmatprep.subr.bf16.mxu1 %v2532_v55  ;;  %v346_v55 = vld [vmem:[#allocation5 + $0x7d8] sm:$0xff]  ;;  %v2554_v58 = vpack.c.bf16 %v341_v52, %v337_v50  ;;  %v377_v48 = vld [vmem:[#allocation5 + $0x8d0] sm:$0xff]  ;;  %v2572_v49 = vpack.c.bf16 %v382_v42, %v378_v41  ;;  %v388_v52 = vld [vmem:[#allocation5 + $0x928] sm:$0xff] }
  0xc3   :  { %v381_v50 = vld [vmem:[#allocation5 + $0x8f0] sm:$0xff]  ;;  %v415_v42 = vld [vmem:[#allocation5 + $0xa00] sm:$0xff] }
  0xc4   :  { %2151 = vmatpush1.bf16.msra.mxu0 %v2150_v61  ;;  %v347_v61 = vld [vmem:[#allocation5 + $0x7e0] sm:$0xff] }
  0xc5   :  { %2535 = vmatpush1.bf16.msra.mxu1 %v2534_v62  ;;  %2153 = vmatprep.subr.bf16.mxu0 %v2152_v63  ;;  %v345_v62 = vld [vmem:[#allocation5 + $0x7d0] sm:$0xff]  ;;  %v2556_v63 = vpack.c.bf16 %v350_v56, %v346_v55  ;;  %v2174_v5 = vpack.c.bf16 %v347_v61, %v343_v60  ;;  %v2574_v56 = vpack.c.bf16 %v381_v50, %v377_v48  ;;  %v428_v48 = vld [vmem:[#allocation5 + $0xa68] sm:$0xff]  ;;  %v430_v50 = vld [vmem:[#allocation5 + $0xa78] sm:$0xff] }
  0xc6   :  { %2537 = vmatprep.subr.bf16.mxu1 %v2536_v3  ;;  %v354_v3 = vld [vmem:[#allocation5 + $0x818] sm:$0xff]  ;;  %v2558_v6 = vpack.c.bf16 %v349_v0, %v345_v62  ;;  %v385_v60 = vld [vmem:[#allocation5 + $0x910] sm:$0xff]  ;;  %v2576_v61 = vpack.c.bf16 %v390_v54, %v386_v53  ;;  %v396_v0 = vld [vmem:[#allocation5 + $0x968] sm:$0xff] }
  0xc7   :  { %v389_v62 = vld [vmem:[#allocation5 + $0x930] sm:$0xff]  ;;  %v423_v54 = vld [vmem:[#allocation5 + $0xa40] sm:$0xff] }
  0xc8   :  { %2155 = vmatpush1.bf16.msra.mxu0 %v2154_v9  ;;  %v355_v9 = vld [vmem:[#allocation5 + $0x820] sm:$0xff] }
  0xc9   :  { %2539 = vmatpush1.bf16.msra.mxu1 %v2538_v10  ;;  %2157 = vmatprep.subr.bf16.mxu0 %v2156_v11  ;;  %v353_v10 = vld [vmem:[#allocation5 + $0x810] sm:$0xff]  ;;  %v2560_v11 = vpack.c.bf16 %v358_v4, %v354_v3  ;;  %v2178_v18 = vpack.c.bf16 %v355_v9, %v351_v8  ;;  %v2578_v4 = vpack.c.bf16 %v389_v62, %v385_v60  ;;  %v436_v60 = vld [vmem:[#allocation5 + $0xaa8] sm:$0xff]  ;;  %v438_v62 = vld [vmem:[#allocation5 + $0xab8] sm:$0xff] }
  0xca   :  { %2541 = vmatprep.subr.bf16.mxu1 %v2540_v15  ;;  %v362_v15 = vld [vmem:[#allocation5 + $0x858] sm:$0xff]  ;;  %v2562_v19 = vpack.c.bf16 %v357_v12, %v353_v10  ;;  %v393_v8 = vld [vmem:[#allocation5 + $0x950] sm:$0xff]  ;;  %v2580_v9 = vpack.c.bf16 %v398_v2, %v394_v1  ;;  %v404_v12 = vld [vmem:[#allocation5 + $0x9a8] sm:$0xff] }
  0xcb   :  { %v2564_v24 = vpack.c.bf16 %v366_v16, %v362_v15  ;;  %v397_v10 = vld [vmem:[#allocation5 + $0x970] sm:$0xff]  ;;  %v431_v2 = vld [vmem:[#allocation5 + $0xa80] sm:$0xff] }
  0xcc   :  { %2159 = vmatpush1.bf16.msra.mxu0 %v2158_v21  ;;  %v359_v21 = vld [vmem:[#allocation5 + $0x840] sm:$0xff]  ;;  %v2582_v16 = vpack.c.bf16 %v397_v10, %v393_v8  ;;  %v444_v8 = vld [vmem:[#allocation5 + $0xae8] sm:$0xff]  ;;  %v446_v10 = vld [vmem:[#allocation5 + $0xaf8] sm:$0xff] }
  0xcd   :  { %2543 = vmatpush1.bf16.msra.mxu1 %v2542_v22  ;;  %2161 = vmatprep.subr.bf16.mxu0 %v2160_v23  ;;  %v363_v22 = vld [vmem:[#allocation5 + $0x860] sm:$0xff]  ;;  %v361_v23 = vld [vmem:[#allocation5 + $0x850] sm:$0xff] }
  0xce   :  { %2545 = vmatprep.subr.bf16.mxu1 %v2544_v27  ;;  %v372_v27 = vld [vmem:[#allocation5 + $0x8a8] sm:$0xff]  ;;  %v2182_v31 = vpack.c.bf16 %v363_v22, %v359_v21  ;;  %v2566_v32 = vpack.c.bf16 %v365_v25, %v361_v23  ;;  %v2584_v21 = vpack.c.bf16 %v406_v14, %v402_v13  ;;  %v405_v22 = vld [vmem:[#allocation5 + $0x9b0] sm:$0xff]  ;;  %v410_v25 = vld [vmem:[#allocation5 + $0x9d8] sm:$0xff] }
  0xcf   :  { %v408_v23 = vld [vmem:[#allocation5 + $0x9c8] sm:$0xff]  ;;  %v439_v14 = vld [vmem:[#allocation5 + $0xac0] sm:$0xff] }
  0xd0   :  { %2163 = vmatpush1.bf16.msra.mxu0 %v2162_v33  ;;  %v2184_v33 = vpack.c.bf16 %v372_v27, %v368_v26  ;;  %v414_v26 = vld [vmem:[#allocation5 + $0x9f8] sm:$0xff] }
  0xd1   :  { %2547 = vmatpush1.bf16.msra.mxu1 %v2546_v34  ;;  %2165 = vmatprep.subr.bf16.mxu0 %v2164_v35  ;;  %v367_v34 = vld [vmem:[#allocation5 + $0x880] sm:$0xff] }
  0xd2   :  { %2549 = vmatprep.subr.bf16.mxu1 %v2548_v39  ;;  %v371_v35 = vld [vmem:[#allocation5 + $0x8a0] sm:$0xff]  ;;  %v376_v39 = vld [vmem:[#allocation5 + $0x8c8] sm:$0xff] }
  0xd3   :  { %v2186_v43 = vpack.c.bf16 %v371_v35, %v367_v34  ;;  %v413_v34 = vld [vmem:[#allocation5 + $0x9f0] sm:$0xff]  ;;  %v416_v35 = vld [vmem:[#allocation5 + $0xa08] sm:$0xff] }
  0xd4   :  { %2167 = vmatpush1.bf16.msra.mxu0 %v2166_v45  ;;  %v2188_v45 = vpack.c.bf16 %v380_v40, %v376_v39  ;;  %v2208_v41 = vpack.c.bf16 %v420_v36, %v416_v35 }
  0xd5   :  { %2551 = vmatpush1.bf16.msra.mxu1 %v2550_v46  ;;  %2169 = vmatprep.subr.bf16.mxu0 %v2168_v47  ;;  %v375_v46 = vld [vmem:[#allocation5 + $0x8c0] sm:$0xff] }
  0xd6   :  { %2553 = vmatprep.subr.bf16.mxu1 %v2552_v51  ;;  %v379_v47 = vld [vmem:[#allocation5 + $0x8e0] sm:$0xff]  ;;  %v384_v51 = vld [vmem:[#allocation5 + $0x908] sm:$0xff] }
  0xd7   :  { %v2190_v55 = vpack.c.bf16 %v379_v47, %v375_v46  ;;  %v421_v46 = vld [vmem:[#allocation5 + $0xa30] sm:$0xff]  ;;  %v424_v47 = vld [vmem:[#allocation5 + $0xa48] sm:$0xff] }
  0xd8   :  { %2171 = vmatpush1.bf16.msra.mxu0 %v2170_v57  ;;  %v2192_v57 = vpack.c.bf16 %v388_v52, %v384_v51  ;;  %v2212_v53 = vpack.c.bf16 %v428_v48, %v424_v47 }
  0xd9   :  { %2555 = vmatpush1.bf16.msra.mxu1 %v2554_v58  ;;  %2173 = vmatprep.subr.bf16.mxu0 %v2172_v59  ;;  %v383_v58 = vld [vmem:[#allocation5 + $0x900] sm:$0xff] }
  0xda   :  { %2557 = vmatprep.subr.bf16.mxu1 %v2556_v63  ;;  %v387_v59 = vld [vmem:[#allocation5 + $0x920] sm:$0xff]  ;;  %v392_v63 = vld [vmem:[#allocation5 + $0x948] sm:$0xff] }
  0xdb   :  { %v2194_v3 = vpack.c.bf16 %v387_v59, %v383_v58  ;;  %v429_v58 = vld [vmem:[#allocation5 + $0xa70] sm:$0xff]  ;;  %v432_v59 = vld [vmem:[#allocation5 + $0xa88] sm:$0xff] }
  0xdc   :  { %2175 = vmatpush1.bf16.msra.mxu0 %v2174_v5  ;;  %v2196_v5 = vpack.c.bf16 %v396_v0, %v392_v63  ;;  %v2216_v1 = vpack.c.bf16 %v436_v60, %v432_v59 }
  0xdd   :  { %2559 = vmatpush1.bf16.msra.mxu1 %v2558_v6  ;;  %2177 = vmatprep.subr.bf16.mxu0 %v2176_v7  ;;  %v391_v6 = vld [vmem:[#allocation5 + $0x940] sm:$0xff] }
  0xde   :  { %2561 = vmatprep.subr.bf16.mxu1 %v2560_v11  ;;  %v395_v7 = vld [vmem:[#allocation5 + $0x960] sm:$0xff]  ;;  %v400_v11 = vld [vmem:[#allocation5 + $0x988] sm:$0xff] }
  0xdf   :  { %1021 = vmatmul.mubr.f32.vlgmr.msra.gmra.mrb[0].mxu0 %v85_v17  ;;  %v2198_v15 = vpack.c.bf16 %v395_v7, %v391_v6  ;;  %v437_v6 = vld [vmem:[#allocation5 + $0xab0] sm:$0xff]  ;;  %v440_v7 = vld [vmem:[#allocation5 + $0xac8] sm:$0xff] }
  0xe0   :  { %2179 = vmatpush1.bf16.msra.mxu0 %v2178_v18  ;;  %1447 = vmatmul.mubr.f32.vlgmr.msra.gmra.mrb[0].mxu1 %v85_v17  ;;  %v2200_v17 = vpack.c.bf16 %v404_v12, %v400_v11  ;;  %v399_v18 = vld [vmem:[#allocation5 + $0x980] sm:$0xff]  ;;  %v2220_v13 = vpack.c.bf16 %v444_v8, %v440_v7 }
  0xe1   :  { %2563 = vmatpush1.bf16.msra.mxu1 %v2562_v19  ;;  %2181 = vmatprep.subr.bf16.mxu0 %v2180_v20  ;;  %v403_v19 = vld [vmem:[#allocation5 + $0x9a0] sm:$0xff]  ;;  %v401_v20 = vld [vmem:[#allocation5 + $0x990] sm:$0xff] }
  0xe2   :  { %2565 = vmatprep.subr.bf16.mxu1 %v2564_v24  ;;  %1091 = vmatprep.mubr.f32.mxu0 %v88_v30  ;;  %v412_v24 = vld [vmem:[#allocation5 + $0x9e8] sm:$0xff]  ;;  %v2202_v27 = vpack.c.bf16 %v403_v19, %v399_v18  ;;  %v2586_v28 = vpack.c.bf16 %v405_v22, %v401_v20  ;;  %v445_v18 = vld [vmem:[#allocation5 + $0xaf0] sm:$0xff]  ;;  %v454_v22 = vld [vmem:[#allocation5 + $0xb38] sm:$0xff] }
  0xe3   :  { %1517 = vmatprep.mubr.f32.mxu1 %v88_v30  ;;  %v2204_v29 = vpack.c.bf16 %v412_v24, %v408_v23  ;;  %v407_v30 = vld [vmem:[#allocation5 + $0x9c0] sm:$0xff]  ;;  %v448_v19 = vld [vmem:[#allocation5 + $0xb08] sm:$0xff] }
  0xe4   :  { %2183 = vmatpush1.bf16.msra.mxu0 %v2182_v31  ;;  %v411_v31 = vld [vmem:[#allocation5 + $0x9e0] sm:$0xff]  ;;  %v452_v20 = vld [vmem:[#allocation5 + $0xb28] sm:$0xff] }
  0xe5   :  { %2567 = vmatpush1.bf16.msra.mxu1 %v2566_v32  ;;  %2185 = vmatprep.subr.bf16.mxu0 %v2184_v33  ;;  %v409_v32 = vld [vmem:[#allocation5 + $0x9d0] sm:$0xff]  ;;  %v2588_v33 = vpack.c.bf16 %v414_v26, %v410_v25  ;;  %v2206_v39 = vpack.c.bf16 %v411_v31, %v407_v30  ;;  %v2224_v25 = vpack.c.bf16 %v452_v20, %v448_v19  ;;  %v447_v26 = vld [vmem:[#allocation5 + $0xb00] sm:$0xff]  ;;  %v456_v31 = vld [vmem:[#allocation5 + $0xb48] sm:$0xff] }
  0xe6   :  { %2569 = vmatprep.subr.bf16.mxu1 %v2568_v37  ;;  %v418_v37 = vld [vmem:[#allocation5 + $0xa18] sm:$0xff]  ;;  %v2590_v40 = vpack.c.bf16 %v413_v34, %v409_v32  ;;  %v453_v30 = vld [vmem:[#allocation5 + $0xb30] sm:$0xff]  ;;  %v460_v32 = vld [vmem:[#allocation5 + $0xb68] sm:$0xff] }
  0xe7   :  { %v462_v34 = vld [vmem:[#allocation5 + $0xb78] sm:$0xff]  ;;  %v87_v19 = vld [vmem:[#allocation2 + $0x20] sm:$0xff] }
  0xe8   :  { %2187 = vmatpush1.bf16.msra.mxu0 %v2186_v43  ;;  %v419_v43 = vld [vmem:[#allocation5 + $0xa20] sm:$0xff] }
  0xe9   :  { %2571 = vmatpush1.bf16.msra.mxu1 %v2570_v44  ;;  %2189 = vmatprep.subr.bf16.mxu0 %v2188_v45  ;;  %v417_v44 = vld [vmem:[#allocation5 + $0xa10] sm:$0xff]  ;;  %v2592_v45 = vpack.c.bf16 %v422_v38, %v418_v37  ;;  %v2210_v51 = vpack.c.bf16 %v419_v43, %v415_v42  ;;  %v2228_v37 = vpack.c.bf16 %v460_v32, %v456_v31  ;;  %v455_v38 = vld [vmem:[#allocation5 + $0xb40] sm:$0xff]  ;;  %v464_v43 = vld [vmem:[#allocation5 + $0xb88] sm:$0xff] }
  0xea   :  { %2573 = vmatprep.subr.bf16.mxu1 %v2572_v49  ;;  %v426_v49 = vld [vmem:[#allocation5 + $0xa58] sm:$0xff]  ;;  %v2594_v52 = vpack.c.bf16 %v421_v46, %v417_v44  ;;  %v461_v42 = vld [vmem:[#allocation5 + $0xb70] sm:$0xff]  ;;  %v468_v44 = vld [vmem:[#allocation5 + $0xba8] sm:$0xff] }
  0xeb   :  { %v470_v46 = vld [vmem:[#allocation5 + $0xbb8] sm:$0xff] }
  0xec   :  { %2191 = vmatpush1.bf16.msra.mxu0 %v2190_v55  ;;  %v427_v55 = vld [vmem:[#allocation5 + $0xa60] sm:$0xff]  ;;  %v502_v31 = vld [vmem:[#allocation5 + $0xcb8] sm:$0xff] }
  0xed   :  { %2575 = vmatpush1.bf16.msra.mxu1 %v2574_v56  ;;  %2193 = vmatprep.subr.bf16.mxu0 %v2192_v57  ;;  %v425_v56 = vld [vmem:[#allocation5 + $0xa50] sm:$0xff]  ;;  %v2596_v57 = vpack.c.bf16 %v430_v50, %v426_v49  ;;  %v2214_v63 = vpack.c.bf16 %v427_v55, %v423_v54  ;;  %v2232_v49 = vpack.c.bf16 %v468_v44, %v464_v43  ;;  %v463_v50 = vld [vmem:[#allocation5 + $0xb80] sm:$0xff]  ;;  %v472_v55 = vld [vmem:[#allocation5 + $0xbc8] sm:$0xff] }
  0xee   :  { %2577 = vmatprep.subr.bf16.mxu1 %v2576_v61  ;;  %v434_v61 = vld [vmem:[#allocation5 + $0xa98] sm:$0xff]  ;;  %v2598_v0 = vpack.c.bf16 %v429_v58, %v425_v56  ;;  %v469_v54 = vld [vmem:[#allocation5 + $0xbb0] sm:$0xff]  ;;  %v476_v56 = vld [vmem:[#allocation5 + $0xbe8] sm:$0xff] }
  0xef   :  { %v478_v58 = vld [vmem:[#allocation5 + $0xbf8] sm:$0xff] }
  0xf0   :  { %2195 = vmatpush1.bf16.msra.mxu0 %v2194_v3  ;;  %v435_v3 = vld [vmem:[#allocation5 + $0xaa0] sm:$0xff]  ;;  %v90_v32 = vld [vmem:[#allocation2 + $0x38] sm:$0xff] }
  0xf1   :  { %2579 = vmatpush1.bf16.msra.mxu1 %v2578_v4  ;;  %2197 = vmatprep.subr.bf16.mxu0 %v2196_v5  ;;  %v433_v4 = vld [vmem:[#allocation5 + $0xa90] sm:$0xff]  ;;  %v2600_v5 = vpack.c.bf16 %v438_v62, %v434_v61  ;;  %v2218_v11 = vpack.c.bf16 %v435_v3, %v431_v2  ;;  %v2236_v61 = vpack.c.bf16 %v476_v56, %v472_v55  ;;  %v471_v62 = vld [vmem:[#allocation5 + $0xbc0] sm:$0xff]  ;;  %v480_v3 = vld [vmem:[#allocation5 + $0xc08] sm:$0xff] }
  0xf2   :  { %2581 = vmatprep.subr.bf16.mxu1 %v2580_v9  ;;  %v442_v9 = vld [vmem:[#allocation5 + $0xad8] sm:$0xff]  ;;  %v2602_v12 = vpack.c.bf16 %v437_v6, %v433_v4  ;;  %v477_v2 = vld [vmem:[#allocation5 + $0xbf0] sm:$0xff]  ;;  %v484_v4 = vld [vmem:[#allocation5 + $0xc28] sm:$0xff] }
  0xf3   :  { %v486_v6 = vld [vmem:[#allocation5 + $0xc38] sm:$0xff] }
  0xf4   :  { %2199 = vmatpush1.bf16.msra.mxu0 %v2198_v15  ;;  %v443_v15 = vld [vmem:[#allocation5 + $0xae0] sm:$0xff]  ;;  %v506_v43 = vld [vmem:[#allocation5 + $0xcd8] sm:$0xff] }
  0xf5   :  { %2583 = vmatpush1.bf16.msra.mxu1 %v2582_v16  ;;  %2201 = vmatprep.subr.bf16.mxu0 %v2200_v17  ;;  %v441_v16 = vld [vmem:[#allocation5 + $0xad0] sm:$0xff]  ;;  %v2604_v17 = vpack.c.bf16 %v446_v10, %v442_v9  ;;  %v2222_v23 = vpack.c.bf16 %v443_v15, %v439_v14  ;;  %v2240_v9 = vpack.c.bf16 %v484_v4, %v480_v3  ;;  %v479_v10 = vld [vmem:[#allocation5 + $0xc00] sm:$0xff]  ;;  %v488_v15 = vld [vmem:[#allocation5 + $0xc48] sm:$0xff] }
  0xf6   :  { %2585 = vmatprep.subr.bf16.mxu1 %v2584_v21  ;;  %v450_v21 = vld [vmem:[#allocation5 + $0xb18] sm:$0xff]  ;;  %v2606_v24 = vpack.c.bf16 %v445_v18, %v441_v16  ;;  %v485_v14 = vld [vmem:[#allocation5 + $0xc30] sm:$0xff]  ;;  %v492_v16 = vld [vmem:[#allocation5 + $0xc68] sm:$0xff] }
  0xf7   :  { %v494_v18 = vld [vmem:[#allocation5 + $0xc78] sm:$0xff] }
  0xf8   :  { %2203 = vmatpush1.bf16.msra.mxu0 %v2202_v27  ;;  %v451_v27 = vld [vmem:[#allocation5 + $0xb20] sm:$0xff]  ;;  %v510_v44 = vld [vmem:[#allocation5 + $0xcf8] sm:$0xff] }
  0xf9   :  { %2587 = vmatpush1.bf16.msra.mxu1 %v2586_v28  ;;  %2205 = vmatprep.subr.bf16.mxu0 %v2204_v29  ;;  %v449_v28 = vld [vmem:[#allocation5 + $0xb10] sm:$0xff]  ;;  %v2608_v29 = vpack.c.bf16 %v454_v22, %v450_v21  ;;  %v2226_v35 = vpack.c.bf16 %v451_v27, %v447_v26  ;;  %v2244_v22 = vpack.c.bf16 %v492_v16, %v488_v15  ;;  %v514_v55 = vld [vmem:[#allocation5 + $0xd18] sm:$0xff] }
  0xfa   :  { %2589 = vmatprep.subr.bf16.mxu1 %v2588_v33  ;;  %v458_v33 = vld [vmem:[#allocation5 + $0xb58] sm:$0xff]  ;;  %v2610_v36 = vpack.c.bf16 %v453_v30, %v449_v28  ;;  %v493_v27 = vld [vmem:[#allocation5 + $0xc70] sm:$0xff]  ;;  %v496_v28 = vld [vmem:[#allocation5 + $0xc88] sm:$0xff] }
  0xfb   :  { %v498_v30 = vld [vmem:[#allocation5 + $0xc98] sm:$0xff] }
  0xfc   :  { %2207 = vmatpush1.bf16.msra.mxu0 %v2206_v39  ;;  %v459_v39 = vld [vmem:[#allocation5 + $0xb60] sm:$0xff]  ;;  %v518_v56 = vld [vmem:[#allocation5 + $0xd38] sm:$0xff] }
  0xfd   :  { %2591 = vmatpush1.bf16.msra.mxu1 %v2590_v40  ;;  %2209 = vmatprep.subr.bf16.mxu0 %v2208_v41  ;;  %v457_v40 = vld [vmem:[#allocation5 + $0xb50] sm:$0xff]  ;;  %v2612_v41 = vpack.c.bf16 %v462_v34, %v458_v33  ;;  %v2230_v47 = vpack.c.bf16 %v459_v39, %v455_v38  ;;  %v2632_v39 = vpack.c.bf16 %v502_v31, %v498_v30  ;;  %v522_v3 = vld [vmem:[#allocation5 + $0xd58] sm:$0xff] }
  0xfe   :  { %2593 = vmatprep.subr.bf16.mxu1 %v2592_v45  ;;  %v466_v45 = vld [vmem:[#allocation5 + $0xb98] sm:$0xff]  ;;  %v2614_v48 = vpack.c.bf16 %v461_v42, %v457_v40  ;;  %v497_v38 = vld [vmem:[#allocation5 + $0xc90] sm:$0xff]  ;;  %v508_v42 = vld [vmem:[#allocation5 + $0xce8] sm:$0xff] }
  0xff   :  { %v501_v40 = vld [vmem:[#allocation5 + $0xcb0] sm:$0xff]  ;;  %v526_v4 = vld [vmem:[#allocation5 + $0xd78] sm:$0xff] }
 0x100   :  { %2211 = vmatpush1.bf16.msra.mxu0 %v2210_v51  ;;  %v467_v51 = vld [vmem:[#allocation5 + $0xba0] sm:$0xff]  ;;  %v530_v15 = vld [vmem:[#allocation5 + $0xd98] sm:$0xff] }
 0x101   :  { %2595 = vmatpush1.bf16.msra.mxu1 %v2594_v52  ;;  %2213 = vmatprep.subr.bf16.mxu0 %v2212_v53  ;;  %v465_v52 = vld [vmem:[#allocation5 + $0xb90] sm:$0xff]  ;;  %v2616_v53 = vpack.c.bf16 %v470_v46, %v466_v45  ;;  %v2234_v59 = vpack.c.bf16 %v467_v51, %v463_v50  ;;  %v2634_v46 = vpack.c.bf16 %v501_v40, %v497_v38  ;;  %v534_v16 = vld [vmem:[#allocation5 + $0xdb8] sm:$0xff]  ;;  %v548_v38 = vld [vmem:[#allocation5 + $0xe28] sm:$0xff] }
 0x102   :  { %2597 = vmatprep.subr.bf16.mxu1 %v2596_v57  ;;  %v474_v57 = vld [vmem:[#allocation5 + $0xbd8] sm:$0xff]  ;;  %v2618_v60 = vpack.c.bf16 %v469_v54, %v465_v52  ;;  %v505_v50 = vld [vmem:[#allocation5 + $0xcd0] sm:$0xff]  ;;  %v2636_v51 = vpack.c.bf16 %v510_v44, %v506_v43  ;;  %v516_v54 = vld [vmem:[#allocation5 + $0xd28] sm:$0xff] }
 0x103   :  { %v509_v52 = vld [vmem:[#allocation5 + $0xcf0] sm:$0xff]  ;;  %v550_v40 = vld [vmem:[#allocation5 + $0xe38] sm:$0xff]  ;;  %v543_v44 = vld [vmem:[#allocation5 + $0xe00] sm:$0xff] }
 0x104   :  { %2215 = vmatpush1.bf16.msra.mxu0 %v2214_v63  ;;  %v475_v63 = vld [vmem:[#allocation5 + $0xbe0] sm:$0xff] }
 0x105   :  { %2599 = vmatpush1.bf16.msra.mxu1 %v2598_v0  ;;  %2217 = vmatprep.subr.bf16.mxu0 %v2216_v1  ;;  %v473_v0 = vld [vmem:[#allocation5 + $0xbd0] sm:$0xff]  ;;  %v2620_v1 = vpack.c.bf16 %v478_v58, %v474_v57  ;;  %v2238_v7 = vpack.c.bf16 %v475_v63, %v471_v62  ;;  %v2638_v58 = vpack.c.bf16 %v509_v52, %v505_v50  ;;  %v556_v50 = vld [vmem:[#allocation5 + $0xe68] sm:$0xff]  ;;  %v558_v52 = vld [vmem:[#allocation5 + $0xe78] sm:$0xff] }
 0x106   :  { %2601 = vmatprep.subr.bf16.mxu1 %v2600_v5  ;;  %v482_v5 = vld [vmem:[#allocation5 + $0xc18] sm:$0xff]  ;;  %v2622_v8 = vpack.c.bf16 %v477_v2, %v473_v0  ;;  %v513_v62 = vld [vmem:[#allocation5 + $0xd10] sm:$0xff]  ;;  %v2640_v63 = vpack.c.bf16 %v518_v56, %v514_v55  ;;  %v524_v2 = vld [vmem:[#allocation5 + $0xd68] sm:$0xff] }
 0x107   :  { %v517_v0 = vld [vmem:[#allocation5 + $0xd30] sm:$0xff]  ;;  %v551_v56 = vld [vmem:[#allocation5 + $0xe40] sm:$0xff] }
 0x108   :  { %2219 = vmatpush1.bf16.msra.mxu0 %v2218_v11  ;;  %v483_v11 = vld [vmem:[#allocation5 + $0xc20] sm:$0xff] }
 0x109   :  { %2603 = vmatpush1.bf16.msra.mxu1 %v2602_v12  ;;  %2221 = vmatprep.subr.bf16.mxu0 %v2220_v13  ;;  %v481_v12 = vld [vmem:[#allocation5 + $0xc10] sm:$0xff]  ;;  %v2624_v13 = vpack.c.bf16 %v486_v6, %v482_v5  ;;  %v2242_v20 = vpack.c.bf16 %v483_v11, %v479_v10  ;;  %v2642_v6 = vpack.c.bf16 %v517_v0, %v513_v62  ;;  %v564_v62 = vld [vmem:[#allocation5 + $0xea8] sm:$0xff]  ;;  %v566_v0 = vld [vmem:[#allocation5 + $0xeb8] sm:$0xff] }
 0x10a   :  { %2605 = vmatprep.subr.bf16.mxu1 %v2604_v17  ;;  %v490_v17 = vld [vmem:[#allocation5 + $0xc58] sm:$0xff]  ;;  %v2626_v21 = vpack.c.bf16 %v485_v14, %v481_v12  ;;  %v521_v10 = vld [vmem:[#allocation5 + $0xd50] sm:$0xff]  ;;  %v2644_v11 = vpack.c.bf16 %v526_v4, %v522_v3  ;;  %v532_v14 = vld [vmem:[#allocation5 + $0xda8] sm:$0xff] }
 0x10b   :  { %v2628_v26 = vpack.c.bf16 %v494_v18, %v490_v17  ;;  %v525_v12 = vld [vmem:[#allocation5 + $0xd70] sm:$0xff]  ;;  %v559_v4 = vld [vmem:[#allocation5 + $0xe80] sm:$0xff] }
 0x10c   :  { %2223 = vmatpush1.bf16.msra.mxu0 %v2222_v23  ;;  %v487_v23 = vld [vmem:[#allocation5 + $0xc40] sm:$0xff]  ;;  %v2646_v18 = vpack.c.bf16 %v525_v12, %v521_v10  ;;  %v572_v10 = vld [vmem:[#allocation5 + $0xee8] sm:$0xff]  ;;  %v574_v12 = vld [vmem:[#allocation5 + $0xef8] sm:$0xff] }
 0x10d   :  { %2607 = vmatpush1.bf16.msra.mxu1 %v2606_v24  ;;  %2225 = vmatprep.subr.bf16.mxu0 %v2224_v25  ;;  %v491_v24 = vld [vmem:[#allocation5 + $0xc60] sm:$0xff]  ;;  %v489_v25 = vld [vmem:[#allocation5 + $0xc50] sm:$0xff] }
 0x10e   :  { %2609 = vmatprep.subr.bf16.mxu1 %v2608_v29  ;;  %v500_v29 = vld [vmem:[#allocation5 + $0xca8] sm:$0xff]  ;;  %v2246_v33 = vpack.c.bf16 %v491_v24, %v487_v23  ;;  %v2630_v34 = vpack.c.bf16 %v493_v27, %v489_v25  ;;  %v2648_v23 = vpack.c.bf16 %v534_v16, %v530_v15  ;;  %v533_v24 = vld [vmem:[#allocation5 + $0xdb0] sm:$0xff]  ;;  %v538_v27 = vld [vmem:[#allocation5 + $0xdd8] sm:$0xff] }
 0x10f   :  { %v536_v25 = vld [vmem:[#allocation5 + $0xdc8] sm:$0xff]  ;;  %v567_v16 = vld [vmem:[#allocation5 + $0xec0] sm:$0xff] }
 0x110   :  { %2227 = vmatpush1.bf16.msra.mxu0 %v2226_v35  ;;  %v2248_v35 = vpack.c.bf16 %v500_v29, %v496_v28  ;;  %v542_v28 = vld [vmem:[#allocation5 + $0xdf8] sm:$0xff] }
 0x111   :  { %2611 = vmatpush1.bf16.msra.mxu1 %v2610_v36  ;;  %2229 = vmatprep.subr.bf16.mxu0 %v2228_v37  ;;  %v495_v36 = vld [vmem:[#allocation5 + $0xc80] sm:$0xff] }
 0x112   :  { %2613 = vmatprep.subr.bf16.mxu1 %v2612_v41  ;;  %v499_v37 = vld [vmem:[#allocation5 + $0xca0] sm:$0xff]  ;;  %v504_v41 = vld [vmem:[#allocation5 + $0xcc8] sm:$0xff] }
 0x113   :  { %v2250_v45 = vpack.c.bf16 %v499_v37, %v495_v36  ;;  %v541_v36 = vld [vmem:[#allocation5 + $0xdf0] sm:$0xff]  ;;  %v544_v37 = vld [vmem:[#allocation5 + $0xe08] sm:$0xff] }
 0x114   :  { %2231 = vmatpush1.bf16.msra.mxu0 %v2230_v47  ;;  %v2252_v47 = vpack.c.bf16 %v508_v42, %v504_v41  ;;  %v2272_v43 = vpack.c.bf16 %v548_v38, %v544_v37 }
 0x115   :  { %2615 = vmatpush1.bf16.msra.mxu1 %v2614_v48  ;;  %2233 = vmatprep.subr.bf16.mxu0 %v2232_v49  ;;  %v503_v48 = vld [vmem:[#allocation5 + $0xcc0] sm:$0xff] }
 0x116   :  { %2617 = vmatprep.subr.bf16.mxu1 %v2616_v53  ;;  %v507_v49 = vld [vmem:[#allocation5 + $0xce0] sm:$0xff]  ;;  %v512_v53 = vld [vmem:[#allocation5 + $0xd08] sm:$0xff] }
 0x117   :  { %v2254_v57 = vpack.c.bf16 %v507_v49, %v503_v48  ;;  %v549_v48 = vld [vmem:[#allocation5 + $0xe30] sm:$0xff]  ;;  %v552_v49 = vld [vmem:[#allocation5 + $0xe48] sm:$0xff] }
 0x118   :  { %2235 = vmatpush1.bf16.msra.mxu0 %v2234_v59  ;;  %v2256_v59 = vpack.c.bf16 %v516_v54, %v512_v53  ;;  %v2276_v55 = vpack.c.bf16 %v556_v50, %v552_v49 }
 0x119   :  { %2619 = vmatpush1.bf16.msra.mxu1 %v2618_v60  ;;  %2237 = vmatprep.subr.bf16.mxu0 %v2236_v61  ;;  %v511_v60 = vld [vmem:[#allocation5 + $0xd00] sm:$0xff] }
 0x11a   :  { %2621 = vmatprep.subr.bf16.mxu1 %v2620_v1  ;;  %v515_v61 = vld [vmem:[#allocation5 + $0xd20] sm:$0xff]  ;;  %v520_v1 = vld [vmem:[#allocation5 + $0xd48] sm:$0xff] }
 0x11b   :  { %v2258_v5 = vpack.c.bf16 %v515_v61, %v511_v60  ;;  %v557_v60 = vld [vmem:[#allocation5 + $0xe70] sm:$0xff]  ;;  %v560_v61 = vld [vmem:[#allocation5 + $0xe88] sm:$0xff] }
 0x11c   :  { %2239 = vmatpush1.bf16.msra.mxu0 %v2238_v7  ;;  %v2260_v7 = vpack.c.bf16 %v524_v2, %v520_v1  ;;  %v2280_v3 = vpack.c.bf16 %v564_v62, %v560_v61 }
 0x11d   :  { %2623 = vmatpush1.bf16.msra.mxu1 %v2622_v8  ;;  %2241 = vmatprep.subr.bf16.mxu0 %v2240_v9  ;;  %v519_v8 = vld [vmem:[#allocation5 + $0xd40] sm:$0xff] }
 0x11e   :  { %2625 = vmatprep.subr.bf16.mxu1 %v2624_v13  ;;  %v523_v9 = vld [vmem:[#allocation5 + $0xd60] sm:$0xff]  ;;  %v528_v13 = vld [vmem:[#allocation5 + $0xd88] sm:$0xff] }
 0x11f   :  { %1092 = vmatmul.mubr.f32.vlgmr.msra.gmra.mrb[0].mxu0 %v87_v19  ;;  %v2262_v17 = vpack.c.bf16 %v523_v9, %v519_v8  ;;  %v565_v8 = vld [vmem:[#allocation5 + $0xeb0] sm:$0xff]  ;;  %v568_v9 = vld [vmem:[#allocation5 + $0xec8] sm:$0xff] }
 0x120   :  { %2243 = vmatpush1.bf16.msra.mxu0 %v2242_v20  ;;  %1518 = vmatmul.mubr.f32.vlgmr.msra.gmra.mrb[0].mxu1 %v87_v19  ;;  %v2264_v19 = vpack.c.bf16 %v532_v14, %v528_v13  ;;  %v527_v20 = vld [vmem:[#allocation5 + $0xd80] sm:$0xff]  ;;  %v2284_v15 = vpack.c.bf16 %v572_v10, %v568_v9 }
 0x121   :  { %2627 = vmatpush1.bf16.msra.mxu1 %v2626_v21  ;;  %2245 = vmatprep.subr.bf16.mxu0 %v2244_v22  ;;  %v531_v21 = vld [vmem:[#allocation5 + $0xda0] sm:$0xff]  ;;  %v529_v22 = vld [vmem:[#allocation5 + $0xd90] sm:$0xff] }
 0x122   :  { %2629 = vmatprep.subr.bf16.mxu1 %v2628_v26  ;;  %1162 = vmatprep.mubr.f32.mxu0 %v90_v32  ;;  %v540_v26 = vld [vmem:[#allocation5 + $0xde8] sm:$0xff]  ;;  %v2266_v29 = vpack.c.bf16 %v531_v21, %v527_v20  ;;  %v2650_v30 = vpack.c.bf16 %v533_v24, %v529_v22  ;;  %v573_v20 = vld [vmem:[#allocation5 + $0xef0] sm:$0xff]  ;;  %v582_v24 = vld [vmem:[#allocation5 + $0xf38] sm:$0xff] }
 0x123   :  { %1588 = vmatprep.mubr.f32.mxu1 %v90_v32  ;;  %v2268_v31 = vpack.c.bf16 %v540_v26, %v536_v25  ;;  %v535_v32 = vld [vmem:[#allocation5 + $0xdc0] sm:$0xff]  ;;  %v576_v21 = vld [vmem:[#allocation5 + $0xf08] sm:$0xff] }
 0x124   :  { %2247 = vmatpush1.bf16.msra.mxu0 %v2246_v33  ;;  %v539_v33 = vld [vmem:[#allocation5 + $0xde0] sm:$0xff]  ;;  %v580_v22 = vld [vmem:[#allocation5 + $0xf28] sm:$0xff] }
 0x125   :  { %2631 = vmatpush1.bf16.msra.mxu1 %v2630_v34  ;;  %2249 = vmatprep.subr.bf16.mxu0 %v2248_v35  ;;  %v537_v34 = vld [vmem:[#allocation5 + $0xdd0] sm:$0xff]  ;;  %v2652_v35 = vpack.c.bf16 %v542_v28, %v538_v27  ;;  %v2270_v41 = vpack.c.bf16 %v539_v33, %v535_v32  ;;  %v2288_v27 = vpack.c.bf16 %v580_v22, %v576_v21  ;;  %v575_v28 = vld [vmem:[#allocation5 + $0xf00] sm:$0xff]  ;;  %v584_v33 = vld [vmem:[#allocation5 + $0xf48] sm:$0xff] }
 0x126   :  { %2633 = vmatprep.subr.bf16.mxu1 %v2632_v39  ;;  %v546_v39 = vld [vmem:[#allocation5 + $0xe18] sm:$0xff]  ;;  %v2654_v42 = vpack.c.bf16 %v541_v36, %v537_v34  ;;  %v581_v32 = vld [vmem:[#allocation5 + $0xf30] sm:$0xff]  ;;  %v588_v34 = vld [vmem:[#allocation5 + $0xf68] sm:$0xff] }
 0x127   :  { %v590_v36 = vld [vmem:[#allocation5 + $0xf78] sm:$0xff]  ;;  %v89_v21 = vld [vmem:[#allocation2 + $0x30] sm:$0xff] }
 0x128   :  { %2251 = vmatpush1.bf16.msra.mxu0 %v2250_v45  ;;  %v547_v45 = vld [vmem:[#allocation5 + $0xe20] sm:$0xff] }
 0x129   :  { %2635 = vmatpush1.bf16.msra.mxu1 %v2634_v46  ;;  %2253 = vmatprep.subr.bf16.mxu0 %v2252_v47  ;;  %v545_v46 = vld [vmem:[#allocation5 + $0xe10] sm:$0xff]  ;;  %v2656_v47 = vpack.c.bf16 %v550_v40, %v546_v39  ;;  %v2274_v53 = vpack.c.bf16 %v547_v45, %v543_v44  ;;  %v2292_v39 = vpack.c.bf16 %v588_v34, %v584_v33  ;;  %v583_v40 = vld [vmem:[#allocation5 + $0xf40] sm:$0xff]  ;;  %v592_v45 = vld [vmem:[#allocation5 + $0xf88] sm:$0xff] }
 0x12a   :  { %2637 = vmatprep.subr.bf16.mxu1 %v2636_v51  ;;  %v554_v51 = vld [vmem:[#allocation5 + $0xe58] sm:$0xff]  ;;  %v2658_v54 = vpack.c.bf16 %v549_v48, %v545_v46  ;;  %v589_v44 = vld [vmem:[#allocation5 + $0xf70] sm:$0xff]  ;;  %v596_v46 = vld [vmem:[#allocation5 + $0xfa8] sm:$0xff] }
 0x12b   :  { %v598_v48 = vld [vmem:[#allocation5 + $0xfb8] sm:$0xff]  ;;  %v92_v34 = vld [vmem:[#allocation2 + $0x48] sm:$0xff] }
 0x12c   :  { %2255 = vmatpush1.bf16.msra.mxu0 %v2254_v57  ;;  %v555_v57 = vld [vmem:[#allocation5 + $0xe60] sm:$0xff]  ;;  %v630_v33 = vld [vmem:[#allocation5 + $0x10b8] sm:$0xff] }
 0x12d   :  { %2639 = vmatpush1.bf16.msra.mxu1 %v2638_v58  ;;  %2257 = vmatprep.subr.bf16.mxu0 %v2256_v59  ;;  %v553_v58 = vld [vmem:[#allocation5 + $0xe50] sm:$0xff]  ;;  %v2660_v59 = vpack.c.bf16 %v558_v52, %v554_v51  ;;  %v2278_v1 = vpack.c.bf16 %v555_v57, %v551_v56  ;;  %v2296_v51 = vpack.c.bf16 %v596_v46, %v592_v45  ;;  %v591_v52 = vld [vmem:[#allocation5 + $0xf80] sm:$0xff]  ;;  %v600_v57 = vld [vmem:[#allocation5 + $0xfc8] sm:$0xff] }
 0x12e   :  { %2641 = vmatprep.subr.bf16.mxu1 %v2640_v63  ;;  %v562_v63 = vld [vmem:[#allocation5 + $0xe98] sm:$0xff]  ;;  %v2662_v2 = vpack.c.bf16 %v557_v60, %v553_v58  ;;  %v597_v56 = vld [vmem:[#allocation5 + $0xfb0] sm:$0xff]  ;;  %v604_v58 = vld [vmem:[#allocation5 + $0xfe8] sm:$0xff] }
 0x12f   :  { %v606_v60 = vld [vmem:[#allocation5 + $0xff8] sm:$0xff] }
 0x130   :  { %2259 = vmatpush1.bf16.msra.mxu0 %v2258_v5  ;;  %v563_v5 = vld [vmem:[#allocation5 + $0xea0] sm:$0xff]  ;;  %v634_v45 = vld [vmem:[#allocation5 + $0x10d8] sm:$0xff] }
 0x131   :  { %2643 = vmatpush1.bf16.msra.mxu1 %v2642_v6  ;;  %2261 = vmatprep.subr.bf16.mxu0 %v2260_v7  ;;  %v561_v6 = vld [vmem:[#allocation5 + $0xe90] sm:$0xff]  ;;  %v2664_v7 = vpack.c.bf16 %v566_v0, %v562_v63  ;;  %v2282_v13 = vpack.c.bf16 %v563_v5, %v559_v4  ;;  %v2300_v63 = vpack.c.bf16 %v604_v58, %v600_v57  ;;  %v599_v0 = vld [vmem:[#allocation5 + $0xfc0] sm:$0xff]  ;;  %v608_v5 = vld [vmem:[#allocation5 + $0x1008] sm:$0xff] }
 0x132   :  { %2645 = vmatprep.subr.bf16.mxu1 %v2644_v11  ;;  %v570_v11 = vld [vmem:[#allocation5 + $0xed8] sm:$0xff]  ;;  %v2666_v14 = vpack.c.bf16 %v565_v8, %v561_v6  ;;  %v605_v4 = vld [vmem:[#allocation5 + $0xff0] sm:$0xff]  ;;  %v612_v6 = vld [vmem:[#allocation5 + $0x1028] sm:$0xff] }
 0x133   :  { %v614_v8 = vld [vmem:[#allocation5 + $0x1038] sm:$0xff] }
 0x134   :  { %2263 = vmatpush1.bf16.msra.mxu0 %v2262_v17  ;;  %v571_v17 = vld [vmem:[#allocation5 + $0xee0] sm:$0xff]  ;;  %v638_v46 = vld [vmem:[#allocation5 + $0x10f8] sm:$0xff] }
 0x135   :  { %2647 = vmatpush1.bf16.msra.mxu1 %v2646_v18  ;;  %2265 = vmatprep.subr.bf16.mxu0 %v2264_v19  ;;  %v569_v18 = vld [vmem:[#allocation5 + $0xed0] sm:$0xff]  ;;  %v2668_v19 = vpack.c.bf16 %v574_v12, %v570_v11  ;;  %v2286_v25 = vpack.c.bf16 %v571_v17, %v567_v16  ;;  %v2304_v11 = vpack.c.bf16 %v612_v6, %v608_v5  ;;  %v607_v12 = vld [vmem:[#allocation5 + $0x1000] sm:$0xff]  ;;  %v616_v17 = vld [vmem:[#allocation5 + $0x1048] sm:$0xff] }
 0x136   :  { %2649 = vmatprep.subr.bf16.mxu1 %v2648_v23  ;;  %v578_v23 = vld [vmem:[#allocation5 + $0xf18] sm:$0xff]  ;;  %v2670_v26 = vpack.c.bf16 %v573_v20, %v569_v18  ;;  %v613_v16 = vld [vmem:[#allocation5 + $0x1030] sm:$0xff]  ;;  %v620_v18 = vld [vmem:[#allocation5 + $0x1068] sm:$0xff] }
 0x137   :  { %v622_v20 = vld [vmem:[#allocation5 + $0x1078] sm:$0xff] }
 0x138   :  { %2267 = vmatpush1.bf16.msra.mxu0 %v2266_v29  ;;  %v579_v29 = vld [vmem:[#allocation5 + $0xf20] sm:$0xff]  ;;  %v642_v57 = vld [vmem:[#allocation5 + $0x1118] sm:$0xff] }
 0x139   :  { %2651 = vmatpush1.bf16.msra.mxu1 %v2650_v30  ;;  %2269 = vmatprep.subr.bf16.mxu0 %v2268_v31  ;;  %v577_v30 = vld [vmem:[#allocation5 + $0xf10] sm:$0xff]  ;;  %v2672_v31 = vpack.c.bf16 %v582_v24, %v578_v23  ;;  %v2290_v37 = vpack.c.bf16 %v579_v29, %v575_v28  ;;  %v2308_v24 = vpack.c.bf16 %v620_v18, %v616_v17  ;;  %v646_v58 = vld [vmem:[#allocation5 + $0x1138] sm:$0xff] }
 0x13a   :  { %2653 = vmatprep.subr.bf16.mxu1 %v2652_v35  ;;  %v586_v35 = vld [vmem:[#allocation5 + $0xf58] sm:$0xff]  ;;  %v2674_v38 = vpack.c.bf16 %v581_v32, %v577_v30  ;;  %v621_v29 = vld [vmem:[#allocation5 + $0x1070] sm:$0xff]  ;;  %v624_v30 = vld [vmem:[#allocation5 + $0x1088] sm:$0xff] }
 0x13b   :  { %v626_v32 = vld [vmem:[#allocation5 + $0x1098] sm:$0xff] }
 0x13c   :  { %2271 = vmatpush1.bf16.msra.mxu0 %v2270_v41  ;;  %v587_v41 = vld [vmem:[#allocation5 + $0xf60] sm:$0xff]  ;;  %v650_v5 = vld [vmem:[#allocation5 + $0x1158] sm:$0xff] }
 0x13d   :  { %2655 = vmatpush1.bf16.msra.mxu1 %v2654_v42  ;;  %2273 = vmatprep.subr.bf16.mxu0 %v2272_v43  ;;  %v585_v42 = vld [vmem:[#allocation5 + $0xf50] sm:$0xff]  ;;  %v2676_v43 = vpack.c.bf16 %v590_v36, %v586_v35  ;;  %v2294_v49 = vpack.c.bf16 %v587_v41, %v583_v40  ;;  %v2696_v41 = vpack.c.bf16 %v630_v33, %v626_v32  ;;  %v654_v6 = vld [vmem:[#allocation5 + $0x1178] sm:$0xff] }
 0x13e   :  { %2657 = vmatprep.subr.bf16.mxu1 %v2656_v47  ;;  %v594_v47 = vld [vmem:[#allocation5 + $0xf98] sm:$0xff]  ;;  %v2678_v50 = vpack.c.bf16 %v589_v44, %v585_v42  ;;  %v625_v40 = vld [vmem:[#allocation5 + $0x1090] sm:$0xff]  ;;  %v636_v44 = vld [vmem:[#allocation5 + $0x10e8] sm:$0xff] }
 0x13f   :  { %v629_v42 = vld [vmem:[#allocation5 + $0x10b0] sm:$0xff]  ;;  %v658_v17 = vld [vmem:[#allocation5 + $0x1198] sm:$0xff] }
 0x140   :  { %2275 = vmatpush1.bf16.msra.mxu0 %v2274_v53  ;;  %v595_v53 = vld [vmem:[#allocation5 + $0xfa0] sm:$0xff]  ;;  %v662_v18 = vld [vmem:[#allocation5 + $0x11b8] sm:$0xff] }
 0x141   :  { %2659 = vmatpush1.bf16.msra.mxu1 %v2658_v54  ;;  %2277 = vmatprep.subr.bf16.mxu0 %v2276_v55  ;;  %v593_v54 = vld [vmem:[#allocation5 + $0xf90] sm:$0xff]  ;;  %v2680_v55 = vpack.c.bf16 %v598_v48, %v594_v47  ;;  %v2298_v61 = vpack.c.bf16 %v595_v53, %v591_v52  ;;  %v2698_v48 = vpack.c.bf16 %v629_v42, %v625_v40  ;;  %v676_v40 = vld [vmem:[#allocation5 + $0x1228] sm:$0xff]  ;;  %v678_v42 = vld [vmem:[#allocation5 + $0x1238] sm:$0xff] }
 0x142   :  { %2661 = vmatprep.subr.bf16.mxu1 %v2660_v59  ;;  %v602_v59 = vld [vmem:[#allocation5 + $0xfd8] sm:$0xff]  ;;  %v2682_v62 = vpack.c.bf16 %v597_v56, %v593_v54  ;;  %v633_v52 = vld [vmem:[#allocation5 + $0x10d0] sm:$0xff]  ;;  %v2700_v53 = vpack.c.bf16 %v638_v46, %v634_v45  ;;  %v644_v56 = vld [vmem:[#allocation5 + $0x1128] sm:$0xff] }
 0x143   :  { %v637_v54 = vld [vmem:[#allocation5 + $0x10f0] sm:$0xff]  ;;  %v671_v46 = vld [vmem:[#allocation5 + $0x1200] sm:$0xff] }
 0x144   :  { %2279 = vmatpush1.bf16.msra.mxu0 %v2278_v1  ;;  %v603_v1 = vld [vmem:[#allocation5 + $0xfe0] sm:$0xff] }
 0x145   :  { %2663 = vmatpush1.bf16.msra.mxu1 %v2662_v2  ;;  %2281 = vmatprep.subr.bf16.mxu0 %v2280_v3  ;;  %v601_v2 = vld [vmem:[#allocation5 + $0xfd0] sm:$0xff]  ;;  %v2684_v3 = vpack.c.bf16 %v606_v60, %v602_v59  ;;  %v2302_v9 = vpack.c.bf16 %v603_v1, %v599_v0  ;;  %v2702_v60 = vpack.c.bf16 %v637_v54, %v633_v52  ;;  %v684_v52 = vld [vmem:[#allocation5 + $0x1268] sm:$0xff]  ;;  %v686_v54 = vld [vmem:[#allocation5 + $0x1278] sm:$0xff] }
 0x146   :  { %2665 = vmatprep.subr.bf16.mxu1 %v2664_v7  ;;  %v610_v7 = vld [vmem:[#allocation5 + $0x1018] sm:$0xff]  ;;  %v2686_v10 = vpack.c.bf16 %v605_v4, %v601_v2  ;;  %v641_v0 = vld [vmem:[#allocation5 + $0x1110] sm:$0xff]  ;;  %v2704_v1 = vpack.c.bf16 %v646_v58, %v642_v57  ;;  %v652_v4 = vld [vmem:[#allocation5 + $0x1168] sm:$0xff] }
 0x147   :  { %v645_v2 = vld [vmem:[#allocation5 + $0x1130] sm:$0xff]  ;;  %v679_v58 = vld [vmem:[#allocation5 + $0x1240] sm:$0xff] }
 0x148   :  { %2283 = vmatpush1.bf16.msra.mxu0 %v2282_v13  ;;  %v611_v13 = vld [vmem:[#allocation5 + $0x1020] sm:$0xff] }
 0x149   :  { %2667 = vmatpush1.bf16.msra.mxu1 %v2666_v14  ;;  %2285 = vmatprep.subr.bf16.mxu0 %v2284_v15  ;;  %v609_v14 = vld [vmem:[#allocation5 + $0x1010] sm:$0xff]  ;;  %v2688_v15 = vpack.c.bf16 %v614_v8, %v610_v7  ;;  %v2306_v22 = vpack.c.bf16 %v611_v13, %v607_v12  ;;  %v2706_v8 = vpack.c.bf16 %v645_v2, %v641_v0  ;;  %v692_v0 = vld [vmem:[#allocation5 + $0x12a8] sm:$0xff]  ;;  %v694_v2 = vld [vmem:[#allocation5 + $0x12b8] sm:$0xff] }
 0x14a   :  { %2669 = vmatprep.subr.bf16.mxu1 %v2668_v19  ;;  %v618_v19 = vld [vmem:[#allocation5 + $0x1058] sm:$0xff]  ;;  %v2690_v23 = vpack.c.bf16 %v613_v16, %v609_v14  ;;  %v649_v12 = vld [vmem:[#allocation5 + $0x1150] sm:$0xff]  ;;  %v2708_v13 = vpack.c.bf16 %v654_v6, %v650_v5  ;;  %v660_v16 = vld [vmem:[#allocation5 + $0x11a8] sm:$0xff] }
 0x14b   :  { %v2692_v28 = vpack.c.bf16 %v622_v20, %v618_v19  ;;  %v653_v14 = vld [vmem:[#allocation5 + $0x1170] sm:$0xff]  ;;  %v687_v6 = vld [vmem:[#allocation5 + $0x1280] sm:$0xff] }
 0x14c   :  { %2287 = vmatpush1.bf16.msra.mxu0 %v2286_v25  ;;  %v615_v25 = vld [vmem:[#allocation5 + $0x1040] sm:$0xff]  ;;  %v2710_v20 = vpack.c.bf16 %v653_v14, %v649_v12  ;;  %v700_v12 = vld [vmem:[#allocation5 + $0x12e8] sm:$0xff]  ;;  %v702_v14 = vld [vmem:[#allocation5 + $0x12f8] sm:$0xff] }
 0x14d   :  { %2671 = vmatpush1.bf16.msra.mxu1 %v2670_v26  ;;  %2289 = vmatprep.subr.bf16.mxu0 %v2288_v27  ;;  %v619_v26 = vld [vmem:[#allocation5 + $0x1060] sm:$0xff]  ;;  %v617_v27 = vld [vmem:[#allocation5 + $0x1050] sm:$0xff] }
 0x14e   :  { %2673 = vmatprep.subr.bf16.mxu1 %v2672_v31  ;;  %v628_v31 = vld [vmem:[#allocation5 + $0x10a8] sm:$0xff]  ;;  %v2310_v35 = vpack.c.bf16 %v619_v26, %v615_v25  ;;  %v2694_v36 = vpack.c.bf16 %v621_v29, %v617_v27  ;;  %v2712_v25 = vpack.c.bf16 %v662_v18, %v658_v17  ;;  %v661_v26 = vld [vmem:[#allocation5 + $0x11b0] sm:$0xff]  ;;  %v666_v29 = vld [vmem:[#allocation5 + $0x11d8] sm:$0xff] }
 0x14f   :  { %v664_v27 = vld [vmem:[#allocation5 + $0x11c8] sm:$0xff]  ;;  %v695_v18 = vld [vmem:[#allocation5 + $0x12c0] sm:$0xff] }
 0x150   :  { %2291 = vmatpush1.bf16.msra.mxu0 %v2290_v37  ;;  %v2312_v37 = vpack.c.bf16 %v628_v31, %v624_v30  ;;  %v670_v30 = vld [vmem:[#allocation5 + $0x11f8] sm:$0xff] }
 0x151   :  { %2675 = vmatpush1.bf16.msra.mxu1 %v2674_v38  ;;  %2293 = vmatprep.subr.bf16.mxu0 %v2292_v39  ;;  %v623_v38 = vld [vmem:[#allocation5 + $0x1080] sm:$0xff] }
 0x152   :  { %2677 = vmatprep.subr.bf16.mxu1 %v2676_v43  ;;  %v627_v39 = vld [vmem:[#allocation5 + $0x10a0] sm:$0xff]  ;;  %v632_v43 = vld [vmem:[#allocation5 + $0x10c8] sm:$0xff] }
 0x153   :  { %v2314_v47 = vpack.c.bf16 %v627_v39, %v623_v38  ;;  %v669_v38 = vld [vmem:[#allocation5 + $0x11f0] sm:$0xff]  ;;  %v672_v39 = vld [vmem:[#allocation5 + $0x1208] sm:$0xff] }
 0x154   :  { %2295 = vmatpush1.bf16.msra.mxu0 %v2294_v49  ;;  %v2316_v49 = vpack.c.bf16 %v636_v44, %v632_v43  ;;  %v2336_v45 = vpack.c.bf16 %v676_v40, %v672_v39 }
 0x155   :  { %2679 = vmatpush1.bf16.msra.mxu1 %v2678_v50  ;;  %2297 = vmatprep.subr.bf16.mxu0 %v2296_v51  ;;  %v631_v50 = vld [vmem:[#allocation5 + $0x10c0] sm:$0xff] }
 0x156   :  { %2681 = vmatprep.subr.bf16.mxu1 %v2680_v55  ;;  %v635_v51 = vld [vmem:[#allocation5 + $0x10e0] sm:$0xff]  ;;  %v640_v55 = vld [vmem:[#allocation5 + $0x1108] sm:$0xff] }
 0x157   :  { %v2318_v59 = vpack.c.bf16 %v635_v51, %v631_v50  ;;  %v677_v50 = vld [vmem:[#allocation5 + $0x1230] sm:$0xff]  ;;  %v680_v51 = vld [vmem:[#allocation5 + $0x1248] sm:$0xff] }
 0x158   :  { %2299 = vmatpush1.bf16.msra.mxu0 %v2298_v61  ;;  %v2320_v61 = vpack.c.bf16 %v644_v56, %v640_v55  ;;  %v2340_v57 = vpack.c.bf16 %v684_v52, %v680_v51 }
 0x159   :  { %2683 = vmatpush1.bf16.msra.mxu1 %v2682_v62  ;;  %2301 = vmatprep.subr.bf16.mxu0 %v2300_v63  ;;  %v639_v62 = vld [vmem:[#allocation5 + $0x1100] sm:$0xff] }
 0x15a   :  { %2685 = vmatprep.subr.bf16.mxu1 %v2684_v3  ;;  %v643_v63 = vld [vmem:[#allocation5 + $0x1120] sm:$0xff]  ;;  %v648_v3 = vld [vmem:[#allocation5 + $0x1148] sm:$0xff] }
 0x15b   :  { %v2322_v7 = vpack.c.bf16 %v643_v63, %v639_v62  ;;  %v685_v62 = vld [vmem:[#allocation5 + $0x1270] sm:$0xff]  ;;  %v688_v63 = vld [vmem:[#allocation5 + $0x1288] sm:$0xff] }
 0x15c   :  { %2303 = vmatpush1.bf16.msra.mxu0 %v2302_v9  ;;  %v2324_v9 = vpack.c.bf16 %v652_v4, %v648_v3  ;;  %v2344_v5 = vpack.c.bf16 %v692_v0, %v688_v63 }
 0x15d   :  { %2687 = vmatpush1.bf16.msra.mxu1 %v2686_v10  ;;  %2305 = vmatprep.subr.bf16.mxu0 %v2304_v11  ;;  %v647_v10 = vld [vmem:[#allocation5 + $0x1140] sm:$0xff] }
 0x15e   :  { %2689 = vmatprep.subr.bf16.mxu1 %v2688_v15  ;;  %v651_v11 = vld [vmem:[#allocation5 + $0x1160] sm:$0xff]  ;;  %v656_v15 = vld [vmem:[#allocation5 + $0x1188] sm:$0xff] }
 0x15f   :  { %1163 = vmatmul.mubr.f32.vlgmr.msra.gmra.mrb[0].mxu0 %v89_v21  ;;  %v2326_v19 = vpack.c.bf16 %v651_v11, %v647_v10  ;;  %v693_v10 = vld [vmem:[#allocation5 + $0x12b0] sm:$0xff]  ;;  %v696_v11 = vld [vmem:[#allocation5 + $0x12c8] sm:$0xff] }
 0x160   :  { %2307 = vmatpush1.bf16.msra.mxu0 %v2306_v22  ;;  %1589 = vmatmul.mubr.f32.vlgmr.msra.gmra.mrb[0].mxu1 %v89_v21  ;;  %v2328_v21 = vpack.c.bf16 %v660_v16, %v656_v15  ;;  %v655_v22 = vld [vmem:[#allocation5 + $0x1180] sm:$0xff]  ;;  %v2348_v17 = vpack.c.bf16 %v700_v12, %v696_v11 }
 0x161   :  { %2691 = vmatpush1.bf16.msra.mxu1 %v2690_v23  ;;  %2309 = vmatprep.subr.bf16.mxu0 %v2308_v24  ;;  %v659_v23 = vld [vmem:[#allocation5 + $0x11a0] sm:$0xff]  ;;  %v657_v24 = vld [vmem:[#allocation5 + $0x1190] sm:$0xff] }
 0x162   :  { %2693 = vmatprep.subr.bf16.mxu1 %v2692_v28  ;;  %1233 = vmatprep.mubr.f32.mxu0 %v92_v34  ;;  %v668_v28 = vld [vmem:[#allocation5 + $0x11e8] sm:$0xff]  ;;  %v2330_v31 = vpack.c.bf16 %v659_v23, %v655_v22  ;;  %v2714_v32 = vpack.c.bf16 %v661_v26, %v657_v24  ;;  %v701_v22 = vld [vmem:[#allocation5 + $0x12f0] sm:$0xff]  ;;  %v710_v26 = vld [vmem:[#allocation5 + $0x1338] sm:$0xff] }
 0x163   :  { %1659 = vmatprep.mubr.f32.mxu1 %v92_v34  ;;  %v2332_v33 = vpack.c.bf16 %v668_v28, %v664_v27  ;;  %v663_v34 = vld [vmem:[#allocation5 + $0x11c0] sm:$0xff]  ;;  %v704_v23 = vld [vmem:[#allocation5 + $0x1308] sm:$0xff] }
 0x164   :  { %2311 = vmatpush1.bf16.msra.mxu0 %v2310_v35  ;;  %v667_v35 = vld [vmem:[#allocation5 + $0x11e0] sm:$0xff]  ;;  %v708_v24 = vld [vmem:[#allocation5 + $0x1328] sm:$0xff] }
 0x165   :  { %2695 = vmatpush1.bf16.msra.mxu1 %v2694_v36  ;;  %2313 = vmatprep.subr.bf16.mxu0 %v2312_v37  ;;  %v665_v36 = vld [vmem:[#allocation5 + $0x11d0] sm:$0xff]  ;;  %v2716_v37 = vpack.c.bf16 %v670_v30, %v666_v29  ;;  %v2334_v43 = vpack.c.bf16 %v667_v35, %v663_v34  ;;  %v2352_v29 = vpack.c.bf16 %v708_v24, %v704_v23  ;;  %v703_v30 = vld [vmem:[#allocation5 + $0x1300] sm:$0xff]  ;;  %v712_v35 = vld [vmem:[#allocation5 + $0x1348] sm:$0xff] }
 0x166   :  { %2697 = vmatprep.subr.bf16.mxu1 %v2696_v41  ;;  %v674_v41 = vld [vmem:[#allocation5 + $0x1218] sm:$0xff]  ;;  %v2718_v44 = vpack.c.bf16 %v669_v38, %v665_v36  ;;  %v709_v34 = vld [vmem:[#allocation5 + $0x1330] sm:$0xff]  ;;  %v716_v36 = vld [vmem:[#allocation5 + $0x1368] sm:$0xff] }
 0x167   :  { %v718_v38 = vld [vmem:[#allocation5 + $0x1378] sm:$0xff]  ;;  %v91_v23 = vld [vmem:[#allocation2 + $0x40] sm:$0xff] }
 0x168   :  { %2315 = vmatpush1.bf16.msra.mxu0 %v2314_v47  ;;  %v675_v47 = vld [vmem:[#allocation5 + $0x1220] sm:$0xff] }
 0x169   :  { %2699 = vmatpush1.bf16.msra.mxu1 %v2698_v48  ;;  %2317 = vmatprep.subr.bf16.mxu0 %v2316_v49  ;;  %v673_v48 = vld [vmem:[#allocation5 + $0x1210] sm:$0xff]  ;;  %v2720_v49 = vpack.c.bf16 %v678_v42, %v674_v41  ;;  %v2338_v55 = vpack.c.bf16 %v675_v47, %v671_v46  ;;  %v2356_v41 = vpack.c.bf16 %v716_v36, %v712_v35  ;;  %v711_v42 = vld [vmem:[#allocation5 + $0x1340] sm:$0xff]  ;;  %v720_v47 = vld [vmem:[#allocation5 + $0x1388] sm:$0xff] }
 0x16a   :  { %2701 = vmatprep.subr.bf16.mxu1 %v2700_v53  ;;  %v682_v53 = vld [vmem:[#allocation5 + $0x1258] sm:$0xff]  ;;  %v2722_v56 = vpack.c.bf16 %v677_v50, %v673_v48  ;;  %v717_v46 = vld [vmem:[#allocation5 + $0x1370] sm:$0xff]  ;;  %v724_v48 = vld [vmem:[#allocation5 + $0x13a8] sm:$0xff] }
 0x16b   :  { %v726_v50 = vld [vmem:[#allocation5 + $0x13b8] sm:$0xff] }
 0x16c   :  { %2319 = vmatpush1.bf16.msra.mxu0 %v2318_v59  ;;  %v683_v59 = vld [vmem:[#allocation5 + $0x1260] sm:$0xff]  ;;  %v758_v35 = vld [vmem:[#allocation5 + $0x14b8] sm:$0xff] }
 0x16d   :  { %2703 = vmatpush1.bf16.msra.mxu1 %v2702_v60  ;;  %2321 = vmatprep.subr.bf16.mxu0 %v2320_v61  ;;  %v681_v60 = vld [vmem:[#allocation5 + $0x1250] sm:$0xff]  ;;  %v2724_v61 = vpack.c.bf16 %v686_v54, %v682_v53  ;;  %v2342_v3 = vpack.c.bf16 %v683_v59, %v679_v58  ;;  %v2360_v53 = vpack.c.bf16 %v724_v48, %v720_v47  ;;  %v719_v54 = vld [vmem:[#allocation5 + $0x1380] sm:$0xff]  ;;  %v728_v59 = vld [vmem:[#allocation5 + $0x13c8] sm:$0xff] }
 0x16e   :  { %2705 = vmatprep.subr.bf16.mxu1 %v2704_v1  ;;  %v690_v1 = vld [vmem:[#allocation5 + $0x1298] sm:$0xff]  ;;  %v2726_v4 = vpack.c.bf16 %v685_v62, %v681_v60  ;;  %v725_v58 = vld [vmem:[#allocation5 + $0x13b0] sm:$0xff]  ;;  %v732_v60 = vld [vmem:[#allocation5 + $0x13e8] sm:$0xff] }
 0x16f   :  { %v734_v62 = vld [vmem:[#allocation5 + $0x13f8] sm:$0xff] }
 0x170   :  { %2323 = vmatpush1.bf16.msra.mxu0 %v2322_v7  ;;  %v691_v7 = vld [vmem:[#allocation5 + $0x12a0] sm:$0xff]  ;;  %v94_v36 = vld [vmem:[#allocation2 + $0x58] sm:$0xff] }
 0x171   :  { %2707 = vmatpush1.bf16.msra.mxu1 %v2706_v8  ;;  %2325 = vmatprep.subr.bf16.mxu0 %v2324_v9  ;;  %v689_v8 = vld [vmem:[#allocation5 + $0x1290] sm:$0xff]  ;;  %v2728_v9 = vpack.c.bf16 %v694_v2, %v690_v1  ;;  %v2346_v15 = vpack.c.bf16 %v691_v7, %v687_v6  ;;  %v2364_v1 = vpack.c.bf16 %v732_v60, %v728_v59  ;;  %v727_v2 = vld [vmem:[#allocation5 + $0x13c0] sm:$0xff]  ;;  %v736_v7 = vld [vmem:[#allocation5 + $0x1408] sm:$0xff] }
 0x172   :  { %2709 = vmatprep.subr.bf16.mxu1 %v2708_v13  ;;  %v698_v13 = vld [vmem:[#allocation5 + $0x12d8] sm:$0xff]  ;;  %v2730_v16 = vpack.c.bf16 %v693_v10, %v689_v8  ;;  %v733_v6 = vld [vmem:[#allocation5 + $0x13f0] sm:$0xff]  ;;  %v740_v8 = vld [vmem:[#allocation5 + $0x1428] sm:$0xff] }
 0x173   :  { %v742_v10 = vld [vmem:[#allocation5 + $0x1438] sm:$0xff] }
 0x174   :  { %2327 = vmatpush1.bf16.msra.mxu0 %v2326_v19  ;;  %v699_v19 = vld [vmem:[#allocation5 + $0x12e0] sm:$0xff]  ;;  %v762_v47 = vld [vmem:[#allocation5 + $0x14d8] sm:$0xff] }
 0x175   :  { %2711 = vmatpush1.bf16.msra.mxu1 %v2710_v20  ;;  %2329 = vmatprep.subr.bf16.mxu0 %v2328_v21  ;;  %v697_v20 = vld [vmem:[#allocation5 + $0x12d0] sm:$0xff]  ;;  %v2732_v21 = vpack.c.bf16 %v702_v14, %v698_v13  ;;  %v2350_v27 = vpack.c.bf16 %v699_v19, %v695_v18  ;;  %v2368_v13 = vpack.c.bf16 %v740_v8, %v736_v7  ;;  %v735_v14 = vld [vmem:[#allocation5 + $0x1400] sm:$0xff]  ;;  %v744_v19 = vld [vmem:[#allocation5 + $0x1448] sm:$0xff] }
 0x176   :  { %2713 = vmatprep.subr.bf16.mxu1 %v2712_v25  ;;  %v706_v25 = vld [vmem:[#allocation5 + $0x1318] sm:$0xff]  ;;  %v2734_v28 = vpack.c.bf16 %v701_v22, %v697_v20  ;;  %v741_v18 = vld [vmem:[#allocation5 + $0x1430] sm:$0xff]  ;;  %v748_v20 = vld [vmem:[#allocation5 + $0x1468] sm:$0xff] }
 0x177   :  { %v750_v22 = vld [vmem:[#allocation5 + $0x1478] sm:$0xff] }
 0x178   :  { %2331 = vmatpush1.bf16.msra.mxu0 %v2330_v31  ;;  %v707_v31 = vld [vmem:[#allocation5 + $0x1320] sm:$0xff]  ;;  %v766_v48 = vld [vmem:[#allocation5 + $0x14f8] sm:$0xff] }
 0x179   :  { %2715 = vmatpush1.bf16.msra.mxu1 %v2714_v32  ;;  %2333 = vmatprep.subr.bf16.mxu0 %v2332_v33  ;;  %v705_v32 = vld [vmem:[#allocation5 + $0x1310] sm:$0xff]  ;;  %v2736_v33 = vpack.c.bf16 %v710_v26, %v706_v25  ;;  %v2354_v39 = vpack.c.bf16 %v707_v31, %v703_v30  ;;  %v2372_v26 = vpack.c.bf16 %v748_v20, %v744_v19  ;;  %v770_v59 = vld [vmem:[#allocation5 + $0x1518] sm:$0xff] }
 0x17a   :  { %2717 = vmatprep.subr.bf16.mxu1 %v2716_v37  ;;  %v714_v37 = vld [vmem:[#allocation5 + $0x1358] sm:$0xff]  ;;  %v2738_v40 = vpack.c.bf16 %v709_v34, %v705_v32  ;;  %v749_v31 = vld [vmem:[#allocation5 + $0x1470] sm:$0xff]  ;;  %v752_v32 = vld [vmem:[#allocation5 + $0x1488] sm:$0xff] }
 0x17b   :  { %v754_v34 = vld [vmem:[#allocation5 + $0x1498] sm:$0xff] }
 0x17c   :  { %2335 = vmatpush1.bf16.msra.mxu0 %v2334_v43  ;;  %v715_v43 = vld [vmem:[#allocation5 + $0x1360] sm:$0xff]  ;;  %v774_v60 = vld [vmem:[#allocation5 + $0x1538] sm:$0xff] }
 0x17d   :  { %2719 = vmatpush1.bf16.msra.mxu1 %v2718_v44  ;;  %2337 = vmatprep.subr.bf16.mxu0 %v2336_v45  ;;  %v713_v44 = vld [vmem:[#allocation5 + $0x1350] sm:$0xff]  ;;  %v2740_v45 = vpack.c.bf16 %v718_v38, %v714_v37  ;;  %v2358_v51 = vpack.c.bf16 %v715_v43, %v711_v42  ;;  %v2760_v43 = vpack.c.bf16 %v758_v35, %v754_v34  ;;  %v778_v7 = vld [vmem:[#allocation5 + $0x1558] sm:$0xff] }
 0x17e   :  { %2721 = vmatprep.subr.bf16.mxu1 %v2720_v49  ;;  %v722_v49 = vld [vmem:[#allocation5 + $0x1398] sm:$0xff]  ;;  %v2742_v52 = vpack.c.bf16 %v717_v46, %v713_v44  ;;  %v753_v42 = vld [vmem:[#allocation5 + $0x1490] sm:$0xff]  ;;  %v764_v46 = vld [vmem:[#allocation5 + $0x14e8] sm:$0xff] }
 0x17f   :  { %v757_v44 = vld [vmem:[#allocation5 + $0x14b0] sm:$0xff]  ;;  %v782_v8 = vld [vmem:[#allocation5 + $0x1578] sm:$0xff] }
 0x180   :  { %2339 = vmatpush1.bf16.msra.mxu0 %v2338_v55  ;;  %v723_v55 = vld [vmem:[#allocation5 + $0x13a0] sm:$0xff]  ;;  %v786_v19 = vld [vmem:[#allocation5 + $0x1598] sm:$0xff] }
 0x181   :  { %2723 = vmatpush1.bf16.msra.mxu1 %v2722_v56  ;;  %2341 = vmatprep.subr.bf16.mxu0 %v2340_v57  ;;  %v721_v56 = vld [vmem:[#allocation5 + $0x1390] sm:$0xff]  ;;  %v2744_v57 = vpack.c.bf16 %v726_v50, %v722_v49  ;;  %v2362_v63 = vpack.c.bf16 %v723_v55, %v719_v54  ;;  %v2762_v50 = vpack.c.bf16 %v757_v44, %v753_v42  ;;  %v790_v20 = vld [vmem:[#allocation5 + $0x15b8] sm:$0xff]  ;;  %v804_v42 = vld [vmem:[#allocation5 + $0x1628] sm:$0xff] }
 0x182   :  { %2725 = vmatprep.subr.bf16.mxu1 %v2724_v61  ;;  %v730_v61 = vld [vmem:[#allocation5 + $0x13d8] sm:$0xff]  ;;  %v2746_v0 = vpack.c.bf16 %v725_v58, %v721_v56  ;;  %v761_v54 = vld [vmem:[#allocation5 + $0x14d0] sm:$0xff]  ;;  %v2764_v55 = vpack.c.bf16 %v766_v48, %v762_v47  ;;  %v772_v58 = vld [vmem:[#allocation5 + $0x1528] sm:$0xff] }
 0x183   :  { %v765_v56 = vld [vmem:[#allocation5 + $0x14f0] sm:$0xff]  ;;  %v806_v44 = vld [vmem:[#allocation5 + $0x1638] sm:$0xff]  ;;  %v799_v48 = vld [vmem:[#allocation5 + $0x1600] sm:$0xff] }
 0x184   :  { %2343 = vmatpush1.bf16.msra.mxu0 %v2342_v3  ;;  %v731_v3 = vld [vmem:[#allocation5 + $0x13e0] sm:$0xff] }
 0x185   :  { %2727 = vmatpush1.bf16.msra.mxu1 %v2726_v4  ;;  %2345 = vmatprep.subr.bf16.mxu0 %v2344_v5  ;;  %v729_v4 = vld [vmem:[#allocation5 + $0x13d0] sm:$0xff]  ;;  %v2748_v5 = vpack.c.bf16 %v734_v62, %v730_v61  ;;  %v2366_v11 = vpack.c.bf16 %v731_v3, %v727_v2  ;;  %v2766_v62 = vpack.c.bf16 %v765_v56, %v761_v54  ;;  %v812_v54 = vld [vmem:[#allocation5 + $0x1668] sm:$0xff]  ;;  %v814_v56 = vld [vmem:[#allocation5 + $0x1678] sm:$0xff] }
 0x186   :  { %2729 = vmatprep.subr.bf16.mxu1 %v2728_v9  ;;  %v738_v9 = vld [vmem:[#allocation5 + $0x1418] sm:$0xff]  ;;  %v2750_v12 = vpack.c.bf16 %v733_v6, %v729_v4  ;;  %v769_v2 = vld [vmem:[#allocation5 + $0x1510] sm:$0xff]  ;;  %v2768_v3 = vpack.c.bf16 %v774_v60, %v770_v59  ;;  %v780_v6 = vld [vmem:[#allocation5 + $0x1568] sm:$0xff] }
 0x187   :  { %v773_v4 = vld [vmem:[#allocation5 + $0x1530] sm:$0xff]  ;;  %v807_v60 = vld [vmem:[#allocation5 + $0x1640] sm:$0xff] }
 0x188   :  { %2347 = vmatpush1.bf16.msra.mxu0 %v2346_v15  ;;  %v739_v15 = vld [vmem:[#allocation5 + $0x1420] sm:$0xff] }
 0x189   :  { %2731 = vmatpush1.bf16.msra.mxu1 %v2730_v16  ;;  %2349 = vmatprep.subr.bf16.mxu0 %v2348_v17  ;;  %v737_v16 = vld [vmem:[#allocation5 + $0x1410] sm:$0xff]  ;;  %v2752_v17 = vpack.c.bf16 %v742_v10, %v738_v9  ;;  %v2370_v24 = vpack.c.bf16 %v739_v15, %v735_v14  ;;  %v2770_v10 = vpack.c.bf16 %v773_v4, %v769_v2  ;;  %v820_v2 = vld [vmem:[#allocation5 + $0x16a8] sm:$0xff]  ;;  %v822_v4 = vld [vmem:[#allocation5 + $0x16b8] sm:$0xff] }
 0x18a   :  { %2733 = vmatprep.subr.bf16.mxu1 %v2732_v21  ;;  %v746_v21 = vld [vmem:[#allocation5 + $0x1458] sm:$0xff]  ;;  %v2754_v25 = vpack.c.bf16 %v741_v18, %v737_v16  ;;  %v777_v14 = vld [vmem:[#allocation5 + $0x1550] sm:$0xff]  ;;  %v2772_v15 = vpack.c.bf16 %v782_v8, %v778_v7  ;;  %v788_v18 = vld [vmem:[#allocation5 + $0x15a8] sm:$0xff] }
 0x18b   :  { %v2756_v30 = vpack.c.bf16 %v750_v22, %v746_v21  ;;  %v781_v16 = vld [vmem:[#allocation5 + $0x1570] sm:$0xff]  ;;  %v815_v8 = vld [vmem:[#allocation5 + $0x1680] sm:$0xff] }
 0x18c   :  { %2351 = vmatpush1.bf16.msra.mxu0 %v2350_v27  ;;  %v743_v27 = vld [vmem:[#allocation5 + $0x1440] sm:$0xff]  ;;  %v2774_v22 = vpack.c.bf16 %v781_v16, %v777_v14  ;;  %v828_v14 = vld [vmem:[#allocation5 + $0x16e8] sm:$0xff]  ;;  %v830_v16 = vld [vmem:[#allocation5 + $0x16f8] sm:$0xff] }
 0x18d   :  { %2735 = vmatpush1.bf16.msra.mxu1 %v2734_v28  ;;  %2353 = vmatprep.subr.bf16.mxu0 %v2352_v29  ;;  %v747_v28 = vld [vmem:[#allocation5 + $0x1460] sm:$0xff]  ;;  %v745_v29 = vld [vmem:[#allocation5 + $0x1450] sm:$0xff] }
 0x18e   :  { %2737 = vmatprep.subr.bf16.mxu1 %v2736_v33  ;;  %v756_v33 = vld [vmem:[#allocation5 + $0x14a8] sm:$0xff]  ;;  %v2374_v37 = vpack.c.bf16 %v747_v28, %v743_v27  ;;  %v2758_v38 = vpack.c.bf16 %v749_v31, %v745_v29  ;;  %v2776_v27 = vpack.c.bf16 %v790_v20, %v786_v19  ;;  %v789_v28 = vld [vmem:[#allocation5 + $0x15b0] sm:$0xff]  ;;  %v794_v31 = vld [vmem:[#allocation5 + $0x15d8] sm:$0xff] }
 0x18f   :  { %v792_v29 = vld [vmem:[#allocation5 + $0x15c8] sm:$0xff]  ;;  %v823_v20 = vld [vmem:[#allocation5 + $0x16c0] sm:$0xff] }
 0x190   :  { %2355 = vmatpush1.bf16.msra.mxu0 %v2354_v39  ;;  %v2376_v39 = vpack.c.bf16 %v756_v33, %v752_v32  ;;  %v798_v32 = vld [vmem:[#allocation5 + $0x15f8] sm:$0xff] }
 0x191   :  { %2739 = vmatpush1.bf16.msra.mxu1 %v2738_v40  ;;  %2357 = vmatprep.subr.bf16.mxu0 %v2356_v41  ;;  %v751_v40 = vld [vmem:[#allocation5 + $0x1480] sm:$0xff] }
 0x192   :  { %2741 = vmatprep.subr.bf16.mxu1 %v2740_v45  ;;  %v755_v41 = vld [vmem:[#allocation5 + $0x14a0] sm:$0xff]  ;;  %v760_v45 = vld [vmem:[#allocation5 + $0x14c8] sm:$0xff] }
 0x193   :  { %v2378_v49 = vpack.c.bf16 %v755_v41, %v751_v40  ;;  %v797_v40 = vld [vmem:[#allocation5 + $0x15f0] sm:$0xff]  ;;  %v800_v41 = vld [vmem:[#allocation5 + $0x1608] sm:$0xff] }
 0x194   :  { %2359 = vmatpush1.bf16.msra.mxu0 %v2358_v51  ;;  %v2380_v51 = vpack.c.bf16 %v764_v46, %v760_v45  ;;  %v2400_v47 = vpack.c.bf16 %v804_v42, %v800_v41 }
 0x195   :  { %2743 = vmatpush1.bf16.msra.mxu1 %v2742_v52  ;;  %2361 = vmatprep.subr.bf16.mxu0 %v2360_v53  ;;  %v759_v52 = vld [vmem:[#allocation5 + $0x14c0] sm:$0xff] }
 0x196   :  { %2745 = vmatprep.subr.bf16.mxu1 %v2744_v57  ;;  %v763_v53 = vld [vmem:[#allocation5 + $0x14e0] sm:$0xff]  ;;  %v768_v57 = vld [vmem:[#allocation5 + $0x1508] sm:$0xff] }
 0x197   :  { %v2382_v61 = vpack.c.bf16 %v763_v53, %v759_v52  ;;  %v805_v52 = vld [vmem:[#allocation5 + $0x1630] sm:$0xff]  ;;  %v808_v53 = vld [vmem:[#allocation5 + $0x1648] sm:$0xff] }
 0x198   :  { %2363 = vmatpush1.bf16.msra.mxu0 %v2362_v63  ;;  %v2384_v63 = vpack.c.bf16 %v772_v58, %v768_v57  ;;  %v2404_v59 = vpack.c.bf16 %v812_v54, %v808_v53 }
 0x199   :  { %2747 = vmatpush1.bf16.msra.mxu1 %v2746_v0  ;;  %2365 = vmatprep.subr.bf16.mxu0 %v2364_v1  ;;  %v767_v0 = vld [vmem:[#allocation5 + $0x1500] sm:$0xff] }
 0x19a   :  { %2749 = vmatprep.subr.bf16.mxu1 %v2748_v5  ;;  %v771_v1 = vld [vmem:[#allocation5 + $0x1520] sm:$0xff]  ;;  %v776_v5 = vld [vmem:[#allocation5 + $0x1548] sm:$0xff] }
 0x19b   :  { %v2386_v9 = vpack.c.bf16 %v771_v1, %v767_v0  ;;  %v813_v0 = vld [vmem:[#allocation5 + $0x1670] sm:$0xff]  ;;  %v816_v1 = vld [vmem:[#allocation5 + $0x1688] sm:$0xff] }
 0x19c   :  { %2367 = vmatpush1.bf16.msra.mxu0 %v2366_v11  ;;  %v2388_v11 = vpack.c.bf16 %v780_v6, %v776_v5  ;;  %v2408_v7 = vpack.c.bf16 %v820_v2, %v816_v1 }
 0x19d   :  { %2751 = vmatpush1.bf16.msra.mxu1 %v2750_v12  ;;  %2369 = vmatprep.subr.bf16.mxu0 %v2368_v13  ;;  %v775_v12 = vld [vmem:[#allocation5 + $0x1540] sm:$0xff] }
 0x19e   :  { %2753 = vmatprep.subr.bf16.mxu1 %v2752_v17  ;;  %v779_v13 = vld [vmem:[#allocation5 + $0x1560] sm:$0xff]  ;;  %v784_v17 = vld [vmem:[#allocation5 + $0x1588] sm:$0xff] }
 0x19f   :  { %1234 = vmatmul.mubr.f32.vlgmr.msra.gmra.mrb[0].mxu0 %v91_v23  ;;  %v2390_v21 = vpack.c.bf16 %v779_v13, %v775_v12  ;;  %v821_v12 = vld [vmem:[#allocation5 + $0x16b0] sm:$0xff]  ;;  %v824_v13 = vld [vmem:[#allocation5 + $0x16c8] sm:$0xff] }
 0x1a0   :  { %2371 = vmatpush1.bf16.msra.mxu0 %v2370_v24  ;;  %1660 = vmatmul.mubr.f32.vlgmr.msra.gmra.mrb[0].mxu1 %v91_v23  ;;  %v2392_v23 = vpack.c.bf16 %v788_v18, %v784_v17  ;;  %v783_v24 = vld [vmem:[#allocation5 + $0x1580] sm:$0xff]  ;;  %v2412_v19 = vpack.c.bf16 %v828_v14, %v824_v13 }
 0x1a1   :  { %2755 = vmatpush1.bf16.msra.mxu1 %v2754_v25  ;;  %2373 = vmatprep.subr.bf16.mxu0 %v2372_v26  ;;  %v787_v25 = vld [vmem:[#allocation5 + $0x15a0] sm:$0xff]  ;;  %v785_v26 = vld [vmem:[#allocation5 + $0x1590] sm:$0xff] }
 0x1a2   :  { %2757 = vmatprep.subr.bf16.mxu1 %v2756_v30  ;;  %1304 = vmatprep.mubr.f32.mxu0 %v94_v36  ;;  %v796_v30 = vld [vmem:[#allocation5 + $0x15e8] sm:$0xff]  ;;  %v2394_v33 = vpack.c.bf16 %v787_v25, %v783_v24  ;;  %v2778_v34 = vpack.c.bf16 %v789_v28, %v785_v26  ;;  %v829_v24 = vld [vmem:[#allocation5 + $0x16f0] sm:$0xff]  ;;  %v838_v28 = vld [vmem:[#allocation5 + $0x1738] sm:$0xff] }
 0x1a3   :  { %1730 = vmatprep.mubr.f32.mxu1 %v94_v36  ;;  %v2396_v35 = vpack.c.bf16 %v796_v30, %v792_v29  ;;  %v791_v36 = vld [vmem:[#allocation5 + $0x15c0] sm:$0xff]  ;;  %v832_v25 = vld [vmem:[#allocation5 + $0x1708] sm:$0xff] }
 0x1a4   :  { %2375 = vmatpush1.bf16.msra.mxu0 %v2374_v37  ;;  %v795_v37 = vld [vmem:[#allocation5 + $0x15e0] sm:$0xff]  ;;  %v836_v26 = vld [vmem:[#allocation5 + $0x1728] sm:$0xff] }
 0x1a5   :  { %2759 = vmatpush1.bf16.msra.mxu1 %v2758_v38  ;;  %2377 = vmatprep.subr.bf16.mxu0 %v2376_v39  ;;  %v793_v38 = vld [vmem:[#allocation5 + $0x15d0] sm:$0xff]  ;;  %v2780_v39 = vpack.c.bf16 %v798_v32, %v794_v31  ;;  %v2398_v45 = vpack.c.bf16 %v795_v37, %v791_v36  ;;  %v2416_v31 = vpack.c.bf16 %v836_v26, %v832_v25  ;;  %v831_v32 = vld [vmem:[#allocation5 + $0x1700] sm:$0xff]  ;;  %v840_v37 = vld [vmem:[#allocation5 + $0x1748] sm:$0xff] }
 0x1a6   :  { %2761 = vmatprep.subr.bf16.mxu1 %v2760_v43  ;;  %v802_v43 = vld [vmem:[#allocation5 + $0x1618] sm:$0xff]  ;;  %v2782_v46 = vpack.c.bf16 %v797_v40, %v793_v38  ;;  %v837_v36 = vld [vmem:[#allocation5 + $0x1730] sm:$0xff]  ;;  %v844_v38 = vld [vmem:[#allocation5 + $0x1768] sm:$0xff] }
 0x1a7   :  { %v846_v40 = vld [vmem:[#allocation5 + $0x1778] sm:$0xff]  ;;  %v93_v25 = vld [vmem:[#allocation2 + $0x50] sm:$0xff] }
 0x1a8   :  { %2379 = vmatpush1.bf16.msra.mxu0 %v2378_v49  ;;  %v803_v49 = vld [vmem:[#allocation5 + $0x1620] sm:$0xff] }
 0x1a9   :  { %2763 = vmatpush1.bf16.msra.mxu1 %v2762_v50  ;;  %2381 = vmatprep.subr.bf16.mxu0 %v2380_v51  ;;  %v801_v50 = vld [vmem:[#allocation5 + $0x1610] sm:$0xff]  ;;  %v2784_v51 = vpack.c.bf16 %v806_v44, %v802_v43  ;;  %v2402_v57 = vpack.c.bf16 %v803_v49, %v799_v48  ;;  %v2420_v43 = vpack.c.bf16 %v844_v38, %v840_v37  ;;  %v839_v44 = vld [vmem:[#allocation5 + $0x1740] sm:$0xff]  ;;  %v848_v49 = vld [vmem:[#allocation5 + $0x1788] sm:$0xff] }
 0x1aa   :  { %2765 = vmatprep.subr.bf16.mxu1 %v2764_v55  ;;  %v810_v55 = vld [vmem:[#allocation5 + $0x1658] sm:$0xff]  ;;  %v2786_v58 = vpack.c.bf16 %v805_v52, %v801_v50  ;;  %v845_v48 = vld [vmem:[#allocation5 + $0x1770] sm:$0xff]  ;;  %v852_v50 = vld [vmem:[#allocation5 + $0x17a8] sm:$0xff] }
 0x1ab   :  { %v854_v52 = vld [vmem:[#allocation5 + $0x17b8] sm:$0xff]  ;;  %v1794_v37 = vld [vmem:[#allocation8 + $0x1a8] sm:$0xff] }
 0x1ac   :  { %2383 = vmatpush1.bf16.msra.mxu0 %v2382_v61  ;;  %v811_v61 = vld [vmem:[#allocation5 + $0x1660] sm:$0xff] }
 0x1ad   :  { %2767 = vmatpush1.bf16.msra.mxu1 %v2766_v62  ;;  %2385 = vmatprep.subr.bf16.mxu0 %v2384_v63  ;;  %v809_v62 = vld [vmem:[#allocation5 + $0x1650] sm:$0xff]  ;;  %v2788_v63 = vpack.c.bf16 %v814_v56, %v810_v55  ;;  %v2406_v5 = vpack.c.bf16 %v811_v61, %v807_v60  ;;  %v2424_v55 = vpack.c.bf16 %v852_v50, %v848_v49  ;;  %v847_v56 = vld [vmem:[#allocation5 + $0x1780] sm:$0xff]  ;;  %v856_v61 = vld [vmem:[#allocation5 + $0x17c8] sm:$0xff] }
 0x1ae   :  { %2769 = vmatprep.subr.bf16.mxu1 %v2768_v3  ;;  %v818_v3 = vld [vmem:[#allocation5 + $0x1698] sm:$0xff]  ;;  %v2790_v6 = vpack.c.bf16 %v813_v0, %v809_v62  ;;  %v853_v60 = vld [vmem:[#allocation5 + $0x17b0] sm:$0xff]  ;;  %v860_v62 = vld [vmem:[#allocation5 + $0x17e8] sm:$0xff] }
 0x1af   :  { %v862_v0 = vld [vmem:[#allocation5 + $0x17f8] sm:$0xff] }
 0x1b0   :  { %2387 = vmatpush1.bf16.msra.mxu0 %v2386_v9  ;;  %v819_v9 = vld [vmem:[#allocation5 + $0x16a0] sm:$0xff] }
 0x1b1   :  { %2771 = vmatpush1.bf16.msra.mxu1 %v2770_v10  ;;  %2389 = vmatprep.subr.bf16.mxu0 %v2388_v11  ;;  %v817_v10 = vld [vmem:[#allocation5 + $0x1690] sm:$0xff]  ;;  %v2792_v11 = vpack.c.bf16 %v822_v4, %v818_v3  ;;  %v2410_v17 = vpack.c.bf16 %v819_v9, %v815_v8  ;;  %v2428_v3 = vpack.c.bf16 %v860_v62, %v856_v61  ;;  %v855_v4 = vld [vmem:[#allocation5 + $0x17c0] sm:$0xff] }
 0x1b2   :  { %2773 = vmatprep.subr.bf16.mxu1 %v2772_v15  ;;  %v826_v15 = vld [vmem:[#allocation5 + $0x16d8] sm:$0xff]  ;;  %v2794_v18 = vpack.c.bf16 %v821_v12, %v817_v10  ;;  %v861_v8 = vld [vmem:[#allocation5 + $0x17f0] sm:$0xff]  ;;  %v1757_v9 = vld [vmem:[#allocation8 + $0x80] sm:$0xff] }
 0x1b3   :  { %v1758_v10 = vld [vmem:[#allocation8 + $0x88] sm:$0xff]  ;;  %v1796_v49 = vld [vmem:[#allocation8 + $0x1b8] sm:$0xff] }
 0x1b4   :  { %2391 = vmatpush1.bf16.msra.mxu0 %v2390_v21  ;;  %v827_v21 = vld [vmem:[#allocation5 + $0x16e0] sm:$0xff]  ;;  %v1790_v12 = vld [vmem:[#allocation8 + $0x188] sm:$0xff] }
 0x1b5   :  { %2775 = vmatpush1.bf16.msra.mxu1 %v2774_v22  ;;  %2393 = vmatprep.subr.bf16.mxu0 %v2392_v23  ;;  %v825_v22 = vld [vmem:[#allocation5 + $0x16d0] sm:$0xff]  ;;  %v2796_v23 = vpack.c.bf16 %v830_v16, %v826_v15  ;;  %v2414_v29 = vpack.c.bf16 %v827_v21, %v823_v20  ;;  %v2816_v15 = vpack.c.bf16 %v1758_v10, %v1757_v9  ;;  %v1741_v16 = vld [vmem:[#allocation8] sm:$0xff]  ;;  %v1800_v9 = vld [vmem:[#allocation8 + $0x1d8] sm:$0xff] }
 0x1b6   :  { %2777 = vmatprep.subr.bf16.mxu1 %v2776_v27  ;;  %v834_v27 = vld [vmem:[#allocation5 + $0x1718] sm:$0xff]  ;;  %v2798_v30 = vpack.c.bf16 %v829_v24, %v825_v22  ;;  %v1774_v20 = vld [vmem:[#allocation8 + $0x108] sm:$0xff] }
 0x1b7   :  { %v1759_v21 = vld [vmem:[#allocation8 + $0x90] sm:$0xff]  ;;  %v1760_v22 = vld [vmem:[#allocation8 + $0x98] sm:$0xff]  ;;  %v1798_v61 = vld [vmem:[#allocation8 + $0x1c8] sm:$0xff] }
 0x1b8   :  { %2395 = vmatpush1.bf16.msra.mxu0 %v2394_v33  ;;  %v835_v33 = vld [vmem:[#allocation5 + $0x1720] sm:$0xff] }
 0x1b9   :  { %2779 = vmatpush1.bf16.msra.mxu1 %v2778_v34  ;;  %2397 = vmatprep.subr.bf16.mxu0 %v2396_v35  ;;  %v833_v34 = vld [vmem:[#allocation5 + $0x1710] sm:$0xff]  ;;  %v2800_v35 = vpack.c.bf16 %v838_v28, %v834_v27  ;;  %v2418_v41 = vpack.c.bf16 %v835_v33, %v831_v32  ;;  %v1792_v24 = vld [vmem:[#allocation8 + $0x198] sm:$0xff]  ;;  %v2820_v28 = vpack.c.bf16 %v1760_v22, %v1759_v21 }
 0x1ba   :  { %2781 = vmatprep.subr.bf16.mxu1 %v2780_v39  ;;  %v842_v39 = vld [vmem:[#allocation5 + $0x1758] sm:$0xff]  ;;  %v2802_v42 = vpack.c.bf16 %v837_v36, %v833_v34  ;;  %v1761_v34 = vld [vmem:[#allocation8 + $0xa0] sm:$0xff]  ;;  %v1802_v21 = vld [vmem:[#allocation8 + $0x1e8] sm:$0xff] }
 0x1bb   :  { %v1776_v33 = vld [vmem:[#allocation8 + $0x118] sm:$0xff]  ;;  %v1793_v36 = vld [vmem:[#allocation8 + $0x1a0] sm:$0xff] }
 0x1bc   :  { %2399 = vmatpush1.bf16.msra.mxu0 %v2398_v45  ;;  %v843_v45 = vld [vmem:[#allocation5 + $0x1760] sm:$0xff] }
 0x1bd   :  { %2783 = vmatpush1.bf16.msra.mxu1 %v2782_v46  ;;  %2401 = vmatprep.subr.bf16.mxu0 %v2400_v47  ;;  %v841_v46 = vld [vmem:[#allocation5 + $0x1750] sm:$0xff]  ;;  %v2804_v47 = vpack.c.bf16 %v846_v40, %v842_v39  ;;  %v2422_v53 = vpack.c.bf16 %v843_v45, %v839_v44  ;;  %v2856_v44 = vpack.c.bf16 %v1794_v37, %v1793_v36  ;;  %v1804_v36 = vld [vmem:[#allocation8 + $0x1f8] sm:$0xff] }
 0x1be   :  { %2785 = vmatprep.subr.bf16.mxu1 %v2784_v51  ;;  %v850_v51 = vld [vmem:[#allocation5 + $0x1798] sm:$0xff]  ;;  %v2806_v54 = vpack.c.bf16 %v845_v48, %v841_v46  ;;  %v1778_v45 = vld [vmem:[#allocation8 + $0x128] sm:$0xff] }
 0x1bf   :  { %v1763_v46 = vld [vmem:[#allocation8 + $0xb0] sm:$0xff] }
 0x1c0   :  { %2403 = vmatpush1.bf16.msra.mxu0 %v2402_v57  ;;  %v851_v57 = vld [vmem:[#allocation5 + $0x17a0] sm:$0xff]  ;;  %v1795_v48 = vld [vmem:[#allocation8 + $0x1b0] sm:$0xff] }
 0x1c1   :  { %2787 = vmatpush1.bf16.msra.mxu1 %v2786_v58  ;;  %2405 = vmatprep.subr.bf16.mxu0 %v2404_v59  ;;  %v849_v58 = vld [vmem:[#allocation5 + $0x1790] sm:$0xff]  ;;  %v2808_v59 = vpack.c.bf16 %v854_v52, %v850_v51  ;;  %v2426_v1 = vpack.c.bf16 %v851_v57, %v847_v56  ;;  %v2860_v56 = vpack.c.bf16 %v1796_v49, %v1795_v48  ;;  %v1780_v57 = vld [vmem:[#allocation8 + $0x138] sm:$0xff] }
 0x1c2   :  { %2789 = vmatprep.subr.bf16.mxu1 %v2788_v63  ;;  %v858_v63 = vld [vmem:[#allocation5 + $0x17d8] sm:$0xff]  ;;  %v2810_v2 = vpack.c.bf16 %v853_v60, %v849_v58  ;;  %v1765_v58 = vld [vmem:[#allocation8 + $0xc0] sm:$0xff] }
 0x1c3   :  { %v1797_v60 = vld [vmem:[#allocation8 + $0x1c0] sm:$0xff]  ;;  %v1755_v37 = vld [vmem:[#allocation8 + $0x70] sm:$0xff] }
 0x1c4   :  { %2407 = vmatpush1.bf16.msra.mxu0 %v2406_v5  ;;  %v859_v5 = vld [vmem:[#allocation5 + $0x17e0] sm:$0xff] }
 0x1c5   :  { %2791 = vmatpush1.bf16.msra.mxu1 %v2790_v6  ;;  %2409 = vmatprep.subr.bf16.mxu0 %v2408_v7  ;;  %v857_v6 = vld [vmem:[#allocation5 + $0x17d0] sm:$0xff]  ;;  %v2812_v7 = vpack.c.bf16 %v862_v0, %v858_v63  ;;  %v2430_v13 = vpack.c.bf16 %v859_v5, %v855_v4  ;;  %v2864_v4 = vpack.c.bf16 %v1798_v61, %v1797_v60 }
 0x1c6   :  { %2793 = vmatprep.subr.bf16.mxu1 %v2792_v11  ;;  %v1789_v11 = vld [vmem:[#allocation8 + $0x180] sm:$0xff]  ;;  %v2814_v14 = vpack.c.bf16 %v861_v8, %v857_v6  ;;  %v1782_v5 = vld [vmem:[#allocation8 + $0x148] sm:$0xff]  ;;  %v1767_v6 = vld [vmem:[#allocation8 + $0xd0] sm:$0xff] }
 0x1c7   :  { %v1799_v8 = vld [vmem:[#allocation8 + $0x1d0] sm:$0xff] }
 0x1c8   :  { %2411 = vmatpush1.bf16.msra.mxu0 %v2410_v17  ;;  %v1742_v17 = vld [vmem:[#allocation8 + $0x8] sm:$0xff] }
 0x1c9   :  { %2795 = vmatpush1.bf16.msra.mxu1 %v2794_v18  ;;  %2413 = vmatprep.subr.bf16.mxu0 %v2412_v19  ;;  %v1773_v18 = vld [vmem:[#allocation8 + $0x100] sm:$0xff]  ;;  %v2848_v19 = vpack.c.bf16 %v1790_v12, %v1789_v11  ;;  %v2818_v26 = vpack.c.bf16 %v1742_v17, %v1741_v16  ;;  %v2868_v16 = vpack.c.bf16 %v1800_v9, %v1799_v8  ;;  %v1784_v17 = vld [vmem:[#allocation8 + $0x158] sm:$0xff] }
 0x1ca   :  { %2797 = vmatprep.subr.bf16.mxu1 %v2796_v23  ;;  %v1791_v23 = vld [vmem:[#allocation8 + $0x190] sm:$0xff]  ;;  %v2850_v27 = vpack.c.bf16 %v1774_v20, %v1773_v18  ;;  %v1769_v18 = vld [vmem:[#allocation8 + $0xe0] sm:$0xff] }
 0x1cb   :  { %v2852_v32 = vpack.c.bf16 %v1792_v24, %v1791_v23  ;;  %v1801_v20 = vld [vmem:[#allocation8 + $0x1e0] sm:$0xff] }
 0x1cc   :  { %2415 = vmatpush1.bf16.msra.mxu0 %v2414_v29  ;;  %v1743_v29 = vld [vmem:[#allocation8 + $0x10] sm:$0xff] }
 0x1cd   :  { %2799 = vmatpush1.bf16.msra.mxu1 %v2798_v30  ;;  %2417 = vmatprep.subr.bf16.mxu0 %v2416_v31  ;;  %v1744_v30 = vld [vmem:[#allocation8 + $0x18] sm:$0xff]  ;;  %v1775_v31 = vld [vmem:[#allocation8 + $0x110] sm:$0xff] }
 0x1ce   :  { %2801 = vmatprep.subr.bf16.mxu1 %v2800_v35  ;;  %v1762_v35 = vld [vmem:[#allocation8 + $0xa8] sm:$0xff]  ;;  %v2822_v38 = vpack.c.bf16 %v1744_v30, %v1743_v29  ;;  %v2854_v39 = vpack.c.bf16 %v1776_v33, %v1775_v31  ;;  %v1772_v33 = vld [vmem:[#allocation8 + $0xf8] sm:$0xff] }
 0x1cf   :  { %v2824_v40 = vpack.c.bf16 %v1762_v35, %v1761_v34  ;;  %v1786_v30 = vld [vmem:[#allocation8 + $0x168] sm:$0xff]  ;;  %v1803_v34 = vld [vmem:[#allocation8 + $0x1f0] sm:$0xff] }
 0x1d0   :  { %2419 = vmatpush1.bf16.msra.mxu0 %v2418_v41  ;;  %v1745_v41 = vld [vmem:[#allocation8 + $0x20] sm:$0xff] }
 0x1d1   :  { %2803 = vmatpush1.bf16.msra.mxu1 %v2802_v42  ;;  %2421 = vmatprep.subr.bf16.mxu0 %v2420_v43  ;;  %v1746_v42 = vld [vmem:[#allocation8 + $0x28] sm:$0xff]  ;;  %v1777_v43 = vld [vmem:[#allocation8 + $0x120] sm:$0xff] }
 0x1d2   :  { %2805 = vmatprep.subr.bf16.mxu1 %v2804_v47  ;;  %v1764_v47 = vld [vmem:[#allocation8 + $0xb8] sm:$0xff]  ;;  %v2826_v50 = vpack.c.bf16 %v1746_v42, %v1745_v41  ;;  %v2858_v51 = vpack.c.bf16 %v1778_v45, %v1777_v43  ;;  %v1787_v41 = vld [vmem:[#allocation8 + $0x170] sm:$0xff] }
 0x1d3   :  { %v2828_v52 = vpack.c.bf16 %v1764_v47, %v1763_v46  ;;  %v1788_v42 = vld [vmem:[#allocation8 + $0x178] sm:$0xff] }
 0x1d4   :  { %2423 = vmatpush1.bf16.msra.mxu0 %v2422_v53  ;;  %v1747_v53 = vld [vmem:[#allocation8 + $0x30] sm:$0xff]  ;;  %v2878_v43 = vpack.c.bf16 %v1788_v42, %v1787_v41  ;;  %v863_v47 = vld [vmem:[#allocation7] sm:$0xf] }
 0x1d5   :  { %2807 = vmatpush1.bf16.msra.mxu1 %v2806_v54  ;;  %2425 = vmatprep.subr.bf16.mxu0 %v2424_v55  ;;  %v1748_v54 = vld [vmem:[#allocation8 + $0x38] sm:$0xff]  ;;  %v1779_v55 = vld [vmem:[#allocation8 + $0x130] sm:$0xff] }
 0x1d6   :  { %2809 = vmatprep.subr.bf16.mxu1 %v2808_v59  ;;  %v1766_v59 = vld [vmem:[#allocation8 + $0xc8] sm:$0xff]  ;;  %v2830_v62 = vpack.c.bf16 %v1748_v54, %v1747_v53  ;;  %v2862_v63 = vpack.c.bf16 %v1780_v57, %v1779_v55 }
 0x1d7   :  { %v2832_v0 = vpack.c.bf16 %v1766_v59, %v1765_v58 }
 0x1d8   :  { %2427 = vmatpush1.bf16.msra.mxu0 %v2426_v1  ;;  %v1749_v1 = vld [vmem:[#allocation8 + $0x40] sm:$0xff] }
 0x1d9   :  { %2811 = vmatpush1.bf16.msra.mxu1 %v2810_v2  ;;  %2429 = vmatprep.subr.bf16.mxu0 %v2428_v3  ;;  %v1750_v2 = vld [vmem:[#allocation8 + $0x48] sm:$0xff]  ;;  %v1781_v3 = vld [vmem:[#allocation8 + $0x140] sm:$0xff] }
 0x1da   :  { %2813 = vmatprep.subr.bf16.mxu1 %v2812_v7  ;;  %v1768_v7 = vld [vmem:[#allocation8 + $0xd8] sm:$0xff]  ;;  %v2834_v10 = vpack.c.bf16 %v1750_v2, %v1749_v1  ;;  %v2866_v11 = vpack.c.bf16 %v1782_v5, %v1781_v3  ;;  %v1977_v5 = vld [vmem:[#allocation10] ss:$0 sm:$0xff] }
 0x1db   :  { %v2836_v12 = vpack.c.bf16 %v1768_v7, %v1767_v6 }
 0x1dc   :  { %2431 = vmatpush1.bf16.msra.mxu0 %v2430_v13  ;;  %v1751_v13 = vld [vmem:[#allocation8 + $0x50] sm:$0xff] }
 0x1dd   :  { %2815 = vmatpush1.bf16.msra.mxu1 %v2814_v14  ;;  %2817 = vmatprep.subr.bf16.mxu0 %v2816_v15  ;;  %v1752_v14 = vld [vmem:[#allocation8 + $0x58] sm:$0xff]  ;;  %v1783_v15 = vld [vmem:[#allocation8 + $0x150] sm:$0xff] }
 0x1de   :  { %2849 = vmatprep.subr.bf16.mxu1 %v2848_v19  ;;  %v1770_v19 = vld [vmem:[#allocation8 + $0xe8] sm:$0xff]  ;;  %v2838_v22 = vpack.c.bf16 %v1752_v14, %v1751_v13  ;;  %v2870_v23 = vpack.c.bf16 %v1784_v17, %v1783_v15 }
 0x1df   :  { %1305 = vmatmul.mubr.f32.vlgmr.msra.gmra.mrb[0].mxu0 %v93_v25  ;;  %v2840_v24 = vpack.c.bf16 %v1770_v19, %v1769_v18 }
 0x1e0   :  { %1731 = vmatmul.mubr.f32.vlgmr.msra.gmra.mrb[0].mxu1 %v93_v25  ;;  %2819 = vmatpush3.bf16.msra.mxu0 %v2818_v26  ;;  %v2872_v25 = vpack.c.bf16 %v1802_v21, %v1801_v20  ;;  %v1753_v26 = vld [vmem:[#allocation8 + $0x60] sm:$0xff] }
 0x1e1   :  { %2851 = vmatpush3.bf16.msra.mxu1 %v2850_v27  ;;  %2821 = vmatprep.subr.bf16.mxu0 %v2820_v28  ;;  %v1754_v27 = vld [vmem:[#allocation8 + $0x68] sm:$0xff]  ;;  %v1785_v28 = vld [vmem:[#allocation8 + $0x160] sm:$0xff] }
 0x1e2   :  { %2853 = vmatprep.subr.bf16.mxu1 %v2852_v32  ;;  %v2842_v29 = vpack.c.bf16 %v1754_v27, %v1753_v26  ;;  %v2874_v31 = vpack.c.bf16 %v1786_v30, %v1785_v28  ;;  %v1771_v32 = vld [vmem:[#allocation8 + $0xf0] sm:$0xff] }
 0x1e3   :  { %v2844_v35 = vpack.c.bf16 %v1772_v33, %v1771_v32 }
 0x1e4   :  { %2823 = vmatpush3.bf16.msra.mxu0 %v2822_v38  ;;  %v1756_v38 = vld [vmem:[#allocation8 + $0x78] sm:$0xff] }
 0x1e5   :  { %2855 = vmatpush3.bf16.msra.mxu1 %v2854_v39  ;;  %2825 = vmatprep.subr.bf16.mxu0 %v2824_v40  ;;  %v2876_v39 = vpack.c.bf16 %v1804_v36, %v1803_v34  ;;  %v2846_v40 = vpack.c.bf16 %v1756_v38, %v1755_v37 }
 0x1e6   :  { %2857 = vmatprep.subr.bf16.mxu1 %v2856_v44  ;;  %v865_v44 = vlaneseq }
 0x1e8   :  { %2827 = vmatpush3.bf16.msra.mxu0 %v2826_v50  ;;  %v866_v45 = vshrl.u32 %v865_v44, 7 }
 0x1e9   :  { %2859 = vmatpush3.bf16.msra.mxu1 %v2858_v51  ;;  %2829 = vmatprep.subr.bf16.mxu0 %v2828_v52 }
 0x1ea   :  { %2861 = vmatprep.subr.bf16.mxu1 %v2860_v56  ;;  %v867_v46 = vsub.s32 0, %v866_v45  ;;  %v875_v48 = vsub.s32 2, %v866_v45  ;;  %v871_v49 = vsub.s32 1, %v866_v45  ;;  %v879_v50 = vsub.s32 3, %v866_v45 }
 0x1ec   :  { %2831 = vmatpush3.bf16.msra.mxu0 %v2830_v62  ;;  %v868_v51 = vrot.slane %v863_v47, %v867_v46  ;;  %v876_v52 = vrot.slane %v863_v47, %v875_v48  ;;  %v872_v53 = vrot.slane %v863_v47, %v871_v49  ;;  %v880_v54 = vrot.slane %v863_v47, %v879_v50 }
 0x1ed   :  { %2863 = vmatpush3.bf16.msra.mxu1 %v2862_v63  ;;  %2833 = vmatprep.subr.bf16.mxu0 %v2832_v0 }
 0x1ee   :  { %2865 = vmatprep.subr.bf16.mxu1 %v2864_v4 }
 0x1f0   :  { %2835 = vmatpush3.bf16.msra.mxu0 %v2834_v10 }
 0x1f1   :  { %2867 = vmatpush3.bf16.msra.mxu1 %v2866_v11  ;;  %2837 = vmatprep.subr.bf16.mxu0 %v2836_v12 }
 0x1f2   :  { %2869 = vmatprep.subr.bf16.mxu1 %v2868_v16 }
 0x1f4   :  { %2839 = vmatpush3.bf16.msra.mxu0 %v2838_v22 }
 0x1f5   :  { %2871 = vmatpush3.bf16.msra.mxu1 %v2870_v23  ;;  %2841 = vmatprep.subr.bf16.mxu0 %v2840_v24 }
 0x1f6   :  { %2873 = vmatprep.subr.bf16.mxu1 %v2872_v25 }
 0x1f8   :  { %2843 = vmatpush3.bf16.msra.mxu0 %v2842_v29 }
 0x1f9   :  { %2875 = vmatpush3.bf16.msra.mxu1 %v2874_v31  ;;  %2845 = vmatprep.subr.bf16.mxu0 %v2844_v35 }
 0x1fa   :  { %2877 = vmatprep.subr.bf16.mxu1 %v2876_v39 }
 0x1fc   :  { %2847 = vmatpush3.bf16.msra.mxu0 %v2846_v40 }
 0x1fd   :  { %2879 = vmatpush3.bf16.msra.mxu1 %v2878_v43 }
 0x2b2   :  { %v1306_v55 = vpop.f32.mrb[0].mxu0 }
 0x2b3   :  { %v2880_v56 = vadd.f32 %v1306_v55, %v868_v51  ;;  %v1732_v57 = vpop.f32.mrb[0].mxu1  ;;  %v1308_v58 = vpop.f32.mrb[1].mxu0 }
 0x2b4   :  { %v2882_v59 = vadd.f32 %v1732_v57, %v876_v52  ;;  %v2881_v60 = vadd.f32 %v1308_v58, %v872_v53  ;;  %v1734_v61 = vpop.f32.mrb[1].mxu1 }
 0x2b5   :  { %v2883_v62 = vadd.f32 %v1734_v61, %v880_v54  ;;  %v1737_v0 = vmax.f32 %v2880_v56, 0.0 }
 0x2b6   :  { %v1738_v63 = vmax.f32 %v2881_v60, 0.0  ;;  %v1739_v2 = vmax.f32 %v2882_v59, 0.0 }
 0x2b7   :  { %v1740_v1 = vmax.f32 %v2883_v62, 0.0 }
 0x2b8   :  { %1876 = vmatprep.mubr.f32.mxu0 %v1738_v63 }
 0x2b9   :  { %1946 = vmatprep.mubr.f32.mxu1 %v1740_v1  ;;  %1877 = vmatmul.mubr.f32.vlgmr.msra.gmra.mrb[2].mxu0 %v1737_v0 }
 0x2ba   :  { %1947 = vmatmul.mubr.f32.vlgmr.msra.gmra.mrb[2].mxu1 %v1739_v2 }
 0x38c   :  { %v2010_v3 = vpop.f32.mrb[2].mxu0 }
 0x38d   :  { %v2045_v4 = vpop.f32.mrb[2].mxu1  ;;  %v2011_v6 = vpop.f32.mrb[3].mxu0 }
 0x38e   :  { %v2012_v7 = vadd.f32 %v2011_v6, %v2010_v3  ;;  %v2046_v8 = vpop.f32.mrb[3].mxu1 }
 0x38f   :  { %v2047_v9 = vadd.f32 %v2046_v8, %v2045_v4 }
 0x390   :  { %v1879_v10 = vadd.f32 %v2012_v7, %v1977_v5 }
 0x392   :  { %v1949_v11 = vadd.f32 %v2047_v9, %v1879_v10 }
 0x394   :  { %v1952_v12 = vmax.f32 %v1949_v11, 0.0 }
 0x396   :  { %v1953_v13 = vmul.f32 %v1952_v12, %v1952_v12 }
 0x398   :  { %1954 = vadd.xlane.f32.xlu0 %v1953_v13 }
 0x425   :  { %v1955_v14 = vpop.xlane.xlu0 %1954 }
 0x426   :  { %v1956_v15 = vmax.f32 %v1955_v14, 1e-24 }
 0x428   :  { %2914 = vrsqrt.f32 %v1956_v15 }
 0x432   :  { %v2915_v16 = vpop.eup %2914 }
 0x433   :  { %v1958_v17 = vmul.f32 %v2915_v16, %v1952_v12 }
 0x435   :  { %1959 = vst [vmem:[#allocation11] sm:$0xff] %v1958_v17 }
 0x436   :  { %3037 = shalt.err (!%p3034_p2)
}
 0x437   :  { %s3038_s6 = scalar_lea.hbm %s3173_s5, 128 }
 0x438   :  { %p3039_p3 = scmp.ne.s32.totalorder %s3173_s5, %s3038_s6  ;;  %p3042_p4 = scmp.lt.u32.totalorder %s3038_s6, %s3173_s5 }
 0x43a   :  { %p3044_p5 = pnand %p3042_p4, %p3039_p3 }
 0x43c   :  { %3047 = shalt.err (!%p3044_p5)
}
 0x43d   :  { %1969 = dma.vmem_to_hbm [thread:$0]  %s1967_s28, 128, %s3173_s5, [#allocation4]  }
 0x43e   :  { %3054 = dma.done.wait [#allocation4], 128  }
 0x43f   :  { %3055 = vsyncadd [#allocation4], 4294967168 }
 0x440   :  { %1973 = vsyncpa [#allocation3], 1 }
 0x441   :  { %1974 = vsyncpa [#allocation6], 1 }
 0x442   :  { %1975 = vsyncpa [#allocation9], 1 }
 0x443   :  { %1976 = vsyncpa [#allocation4], 1 }

</bundles_post_ra>
